<compile_context>
chip_gen: v6e
topology: v6e:2x2x1
jax: 0.10.0
libtpu: 0.0.40
codegen_flags: <defaults>
</compile_context>

<pallas_src>
import functools
import math

import jax
import jax.numpy as jnp
from jax.experimental import pallas as pl
from jax.experimental.pallas import tpu as pltpu


def _cdiv(a, b):
    return -(-a // b)


def _rope_flat_kernel(pos_ref, w_ref, cos_ref, sin_ref, *, t, scale):
    # pos_ref: (B, R, t) int32   -- t consecutive positions per row
    # w_ref:   (t, 1, F) f32     -- masked inv-freq expansion pattern, F = t*dim
    # cos_ref / sin_ref: (B, R, F) out dtype (lane-dense flat layout)
    pos = pos_ref[...].astype(jnp.float32)               # (B, R, t)
    w = w_ref[...]                                        # (t, 1, F)
    # freqs[b, r, i*dim + j] = pos[b, r, i] * inv_tiled[j]   (exact f32: other
    # terms are exact zeros, so this is bit-identical to a direct pos*inv mul).
    freqs = pos[:, :, 0:1] * w[0:1]                       # (B, R, F)
    for i in range(1, t):
        freqs = freqs + pos[:, :, i:i + 1] * w[i:i + 1]
    cos = jnp.cos(freqs)
    sin = jnp.sin(freqs)
    if scale is not None:                                 # skip mul when scaling == 1.0
        cos = cos * scale
        sin = sin * scale
    cos_ref[...] = cos.astype(cos_ref.dtype)
    sin_ref[...] = sin.astype(sin_ref.dtype)


def phi3_rotary_embedding(x, position_ids, inv_freq, attention_scaling=1.0,
                          max_positions_per_tile=2048,
                          vmem_budget_bytes=16 * 1024 * 1024):
    """Returns (cos, sin) with shape position_ids.shape + (dim,), dtype of x."""
    B, S = position_ids.shape
    inv_freq = inv_freq.reshape(-1).astype(jnp.float32)
    half = inv_freq.shape[0]
    dim = 2 * half
    out_dtype = x.dtype
    out_dsize = jnp.dtype(out_dtype).itemsize

    # Lane-dense grouping: t consecutive positions -> flat width F = t*dim, 128 | F.
    t = 128 // math.gcd(dim, 128)
    F = t * dim
    P = max(128, 8 * t)                      # seq padding unit (keeps sublanes % 8 == 0)

    # --- tile-size selection ------------------------------------------------
    n_units = _cdiv(S, P)                                    # seq length in P-units
    bytes_per_unit = 2 * 2 * B * P * dim * out_dsize         # 2 outputs x 2 buffers
    max_units = min(max(1, vmem_budget_bytes // bytes_per_unit),
                    max(1, max_positions_per_tile // P),
                    n_units)
    if n_units >= 2:                         # keep >= 2 grid steps: v7x has 2 TCs
        max_units = min(max_units, _cdiv(n_units, 2))
    max_units = max(1, max_units)
    seq_tile = max_units * P                 # positions per grid step
    grid_s = _cdiv(n_units * P, seq_tile)
    S_pad = grid_s * seq_tile
    rows_tile = seq_tile // t

    # --- tiny host-side prep --------------------------------------------------
    pos = position_ids.astype(jnp.int32)
    if S_pad != S:
        pos = jnp.pad(pos, ((0, 0), (0, S_pad - S)))
    pos3 = pos.reshape(B, S_pad // t, t)     # free reshape (contiguous)

    # emb = cat(freqs, freqs): inv_tiled[j] = inv_freq[j % half]
    inv_tiled = jnp.concatenate([inv_freq, inv_freq])                  # (dim,)
    eye = jnp.eye(t, dtype=jnp.float32)
    w = (eye[:, :, None] * inv_tiled[None, None, :]).reshape(t, 1, F)  # (t, 1, F)

    scale = float(attention_scaling)
    kernel = functools.partial(_rope_flat_kernel, t=t,
                               scale=None if scale == 1.0 else scale)

    n_elems = B * S_pad * dim
    cost = pl.CostEstimate(
        flops=int(n_elems * (2 * t + 2)),
        transcendentals=int(2 * n_elems),
        bytes_accessed=int(2 * n_elems * out_dsize + B * S_pad * 4 + t * F * 4),
    )

    block_out_bytes = B * rows_tile * F * out_dsize
    vmem_need = (2 * 2 * block_out_bytes           # two outputs, double-buffered
                 + 2 * B * rows_tile * t * 4       # position blocks
                 + 2 * t * F * 4                   # W
                 + (2 << 20))                      # headroom
    vmem_limit = int(min(max(vmem_need, 16 << 20), 40 << 20))  # v7x: 64 MiB physical

    out_struct = jax.ShapeDtypeStruct((B, S_pad // t, F), out_dtype)
    cos_f, sin_f = pl.pallas_call(
        kernel,
        out_shape=(out_struct, out_struct),
        grid_spec=pltpu.PrefetchScalarGridSpec(
            num_scalar_prefetch=0,
            grid=(grid_s,),
            in_specs=[
                pl.BlockSpec((B, rows_tile, t), lambda s: (0, s, 0)),   # positions
                pl.BlockSpec((t, 1, F), lambda s: (0, 0, 0)),           # W (constant)
            ],
            out_specs=[
                pl.BlockSpec((B, rows_tile, F), lambda s: (0, s, 0)),   # cos
                pl.BlockSpec((B, rows_tile, F), lambda s: (0, s, 0)),   # sin
            ],
        ),
        compiler_params=pltpu.CompilerParams(
            dimension_semantics=("parallel",),
            vmem_limit_bytes=vmem_limit),
        cost_estimate=cost,
    )(pos3, w)

    # (B, S_pad//t, t*dim) -> (B, S_pad, dim) is a free (contiguous) regrouping.
    cos = cos_f.reshape(B, S_pad, dim)
    sin = sin_f.reshape(B, S_pad, dim)
    if S_pad != S:
        cos = cos[:, :S]
        sin = sin[:, :S]
    return cos, sin


def _make_default_inv_freq(dim, rope_theta):
    # ROPE_INIT_FUNCTIONS["default"]: inv_freq, attention_scaling = 1.0
    exponents = jnp.arange(0, dim, 2, dtype=jnp.float32) / dim
    return 1.0 / (rope_theta ** exponents), 1.0


def _reference(x, position_ids, inv_freq, attention_scaling):
    # Pure-JAX reference mirroring the PyTorch cache-then-gather path (f32 cache).
    seq_len = int(position_ids.max()) + 1
    seq_len = math.ceil(seq_len / 4096) * 4096
    tt = jnp.arange(seq_len, dtype=jnp.float32)
    freqs = jnp.outer(tt, inv_freq.astype(jnp.float32))
    emb = jnp.concatenate([freqs, freqs], axis=-1)
    cos = (jnp.cos(emb) * attention_scaling).astype(x.dtype)
    sin = (jnp.sin(emb) * attention_scaling).astype(x.dtype)
    return cos[position_ids], sin[position_ids]


if __name__ == "__main__":
    key = jax.random.PRNGKey(0)
    k1, k2, k3 = jax.random.split(key, 3)
    rope_theta = 10000.0

    # Case 1: small Phi3-like config (hidden=64, heads=2 -> head_dim=32), f32.
    B, S, head_dim = 2, 128, 32
    x = jax.random.normal(k1, (B, S, 2 * head_dim), dtype=jnp.float32)
    position_ids = jnp.broadcast_to(jnp.arange(S, dtype=jnp.int32)[None, :], (B, S))
    inv_freq, scaling = _make_default_inv_freq(head_dim, rope_theta)

    cos, sin = jax.block_until_ready(
        phi3_rotary_embedding(x, position_ids, inv_freq, scaling))
    cos_ref, sin_ref = _reference(x, position_ids, inv_freq, scaling)
    assert cos.shape == (B, S, head_dim) and sin.shape == (B, S, head_dim)
    assert cos.dtype == x.dtype and sin.dtype == x.dtype
    assert jnp.allclose(cos, cos_ref, atol=2e-5, rtol=2e-5)
    assert jnp.allclose(sin, sin_ref, atol=2e-5, rtol=2e-5)

    # Case 2: ragged seq len, arbitrary positions, bf16 activations, head_dim=64.
    B2, S2, head_dim2 = 2, 200, 64
    x2 = jax.random.normal(k2, (B2, S2, 4 * head_dim2), dtype=jnp.bfloat16)
    pos2 = jax.random.randint(k3, (B2, S2), 0, 1000, dtype=jnp.int32)
    inv_freq2, scaling2 = _make_default_inv_freq(head_dim2, rope_theta)

    cos2, sin2 = jax.block_until_ready(
        phi3_rotary_embedding(x2, pos2, inv_freq2, scaling2))
    cos2_ref, sin2_ref = _reference(x2, pos2, inv_freq2, scaling2)
    assert cos2.shape == (B2, S2, head_dim2) and cos2.dtype == jnp.bfloat16
    assert jnp.allclose(cos2.astype(jnp.float32), cos2_ref.astype(jnp.float32),
                        atol=2e-2, rtol=1e-2)
    assert jnp.allclose(sin2.astype(jnp.float32), sin2_ref.astype(jnp.float32),
                        atol=2e-2, rtol=1e-2)

    print("KERNEL_OK")
</pallas_src>

<mosaic_0001>
module attributes {stable_mosaic.version = 11 : i64} {
  func.func @_rope_flat_kernel(%arg0: i32, %arg1: memref<2x32x4xi32, #tpu.memory_space<vmem>>, %arg2: memref<4x1x128xf32, #tpu.memory_space<vmem>>, %arg3: memref<2x32x128xf32, #tpu.memory_space<vmem>>, %arg4: memref<2x32x128xf32, #tpu.memory_space<vmem>>) attributes {dimension_semantics = [#tpu.dimension_semantics<parallel>], iteration_bounds = array<i64: 1>, scalar_prefetch = 0 : i64, scratch_operands = 0 : i64, tpu.core_type = #tpu.core_type<tc>, window_params = [{transform_indices = @transform_0, window_bounds = array<i64: 2, 32, 4>}, {pipeline_mode = #tpu.pipeline_mode<synchronous>, transform_indices = @transform_1, window_bounds = array<i64: 4, 1, 128>}, {transform_indices = @transform_2, window_bounds = array<i64: 2, 32, 128>}, {transform_indices = @transform_3, window_bounds = array<i64: 2, 32, 128>}]} {
    %c0 = arith.constant 0 : index
    %c0_0 = arith.constant 0 : index
    %c0_1 = arith.constant 0 : index
    %0 = vector.load %arg1[%c0, %c0_0, %c0_1] : memref<2x32x4xi32, #tpu.memory_space<vmem>>, vector<2x32x4xi32>
    %1 = arith.sitofp %0 : vector<2x32x4xi32> to vector<2x32x4xf32>
    %c0_2 = arith.constant 0 : index
    %c0_3 = arith.constant 0 : index
    %c0_4 = arith.constant 0 : index
    %2 = vector.load %arg2[%c0_2, %c0_3, %c0_4] : memref<4x1x128xf32, #tpu.memory_space<vmem>>, vector<4x1x128xf32>
    %3 = vector.extract_strided_slice %1 {offsets = [0, 0, 0], sizes = [2, 32, 1], strides = [1, 1, 1]} : vector<2x32x4xf32> to vector<2x32x1xf32>
    %4 = vector.extract_strided_slice %2 {offsets = [0, 0, 0], sizes = [1, 1, 128], strides = [1, 1, 1]} : vector<4x1x128xf32> to vector<1x1x128xf32>
    %5 = vector.broadcast %3 : vector<2x32x1xf32> to vector<2x32x128xf32>
    %6 = vector.broadcast %4 : vector<1x1x128xf32> to vector<2x32x128xf32>
    %7 = arith.mulf %5, %6 : vector<2x32x128xf32>
    %8 = vector.extract_strided_slice %1 {offsets = [0, 0, 1], sizes = [2, 32, 1], strides = [1, 1, 1]} : vector<2x32x4xf32> to vector<2x32x1xf32>
    %9 = vector.extract_strided_slice %2 {offsets = [1, 0, 0], sizes = [1, 1, 128], strides = [1, 1, 1]} : vector<4x1x128xf32> to vector<1x1x128xf32>
    %10 = vector.broadcast %8 : vector<2x32x1xf32> to vector<2x32x128xf32>
    %11 = vector.broadcast %9 : vector<1x1x128xf32> to vector<2x32x128xf32>
    %12 = arith.mulf %10, %11 : vector<2x32x128xf32>
    %13 = arith.addf %7, %12 : vector<2x32x128xf32>
    %14 = vector.extract_strided_slice %1 {offsets = [0, 0, 2], sizes = [2, 32, 1], strides = [1, 1, 1]} : vector<2x32x4xf32> to vector<2x32x1xf32>
    %15 = vector.extract_strided_slice %2 {offsets = [2, 0, 0], sizes = [1, 1, 128], strides = [1, 1, 1]} : vector<4x1x128xf32> to vector<1x1x128xf32>
    %16 = vector.broadcast %14 : vector<2x32x1xf32> to vector<2x32x128xf32>
    %17 = vector.broadcast %15 : vector<1x1x128xf32> to vector<2x32x128xf32>
    %18 = arith.mulf %16, %17 : vector<2x32x128xf32>
    %19 = arith.addf %13, %18 : vector<2x32x128xf32>
    %20 = vector.extract_strided_slice %1 {offsets = [0, 0, 3], sizes = [2, 32, 1], strides = [1, 1, 1]} : vector<2x32x4xf32> to vector<2x32x1xf32>
    %21 = vector.extract_strided_slice %2 {offsets = [3, 0, 0], sizes = [1, 1, 128], strides = [1, 1, 1]} : vector<4x1x128xf32> to vector<1x1x128xf32>
    %22 = vector.broadcast %20 : vector<2x32x1xf32> to vector<2x32x128xf32>
    %23 = vector.broadcast %21 : vector<1x1x128xf32> to vector<2x32x128xf32>
    %24 = arith.mulf %22, %23 : vector<2x32x128xf32>
    %25 = arith.addf %19, %24 : vector<2x32x128xf32>
    %26 = math.cos %25 : vector<2x32x128xf32>
    %27 = math.sin %25 : vector<2x32x128xf32>
    %c0_5 = arith.constant 0 : index
    %c0_6 = arith.constant 0 : index
    %c0_7 = arith.constant 0 : index
    %28 = vector.load %arg3[%c0_5, %c0_6, %c0_7] : memref<2x32x128xf32, #tpu.memory_space<vmem>>, vector<2x32x128xf32>
    tpu.vector_store %arg3[%c0_5, %c0_6, %c0_7], %26 {strides = array<i32>} : memref<2x32x128xf32, #tpu.memory_space<vmem>>, vector<2x32x128xf32>,
    %c0_8 = arith.constant 0 : index
    %c0_9 = arith.constant 0 : index
    %c0_10 = arith.constant 0 : index
    %29 = vector.load %arg4[%c0_8, %c0_9, %c0_10] : memref<2x32x128xf32, #tpu.memory_space<vmem>>, vector<2x32x128xf32>
    tpu.vector_store %arg4[%c0_8, %c0_9, %c0_10], %27 {strides = array<i32>} : memref<2x32x128xf32, #tpu.memory_space<vmem>>, vector<2x32x128xf32>,
    return
  }
  func.func @transform_0(%arg0: i32) -> (i32, i32, i32) {
    %c0_i32 = arith.constant 0 : i32
    %c0_i32_0 = arith.constant 0 : i32
    %c0_i32_1 = arith.constant 0 : i32
    return %c0_i32, %arg0, %c0_i32_0 : i32, i32, i32
  }
  func.func @transform_1(%arg0: i32) -> (i32, i32, i32) {
    %c0_i32 = arith.constant 0 : i32
    %c0_i32_0 = arith.constant 0 : i32
    %c0_i32_1 = arith.constant 0 : i32
    %c0_i32_2 = arith.constant 0 : i32
    return %c0_i32, %c0_i32_0, %c0_i32_1 : i32, i32, i32
  }
  func.func @transform_2(%arg0: i32) -> (i32, i32, i32) {
    %c0_i32 = arith.constant 0 : i32
    %c0_i32_0 = arith.constant 0 : i32
    %c0_i32_1 = arith.constant 0 : i32
    return %c0_i32, %arg0, %c0_i32_0 : i32, i32, i32
  }
  func.func @transform_3(%arg0: i32) -> (i32, i32, i32) {
    %c0_i32 = arith.constant 0 : i32
    %c0_i32_0 = arith.constant 0 : i32
    %c0_i32_1 = arith.constant 0 : i32
    return %c0_i32, %arg0, %c0_i32_0 : i32, i32, i32
  }
}

</mosaic_0001>

<bundles_post_ra>
// kernel: tpu_custom_call.1
= control target key start
LH: loop header
LB: loop body
LE: loop exit
PB: predicated region body
PF: predicated region fallthrough
CT: control target
= control target key end

     0   :  { %9 = vsyncpa [#allocation3], 0  ;;  %v2154_v3 = vmov 0   ;;  %s2948_s0 = inlined_call_operand.vmem [shape: s32[2,32,4], index: 0, kind: input, shape index: {}]   ;;  %s2949_s1 = inlined_call_operand.vmem [shape: f32[4,1,128], index: 1, kind: input, shape index: {}]   ;;  %s2950_s2 = inlined_call_operand.hbm [shape: f32[2,32,128], index: 2, kind: output, shape index: {0}]   ;;  %s2951_s3 = inlined_call_operand.hbm [shape: f32[2,32,128], index: 3, kind: output, shape index: {1}]  }
   0x1   :  { %v17_v0 = vld [vmem:[%s2948_s0 + $0x10] sm:$0xff]  ;;  %v15_v1 = vld [vmem:[%s2948_s0] sm:$0xff]  ;;  %v18_v2 = vld [vmem:[%s2948_s0 + $0x18] sm:$0xff]  ;;  %2070 = vset.pattern.permute.xlu1 %v2154_v3  ;;  %2069 = vset.pattern.permute.xlu0 %v2154_v3 }
   0x2   :  { %v25_v4 = vcvt.s32.f32 %v17_v0  ;;  %v23_v5 = vcvt.s32.f32 %v15_v1  ;;  %v16_v6 = vld [vmem:[%s2948_s0 + $0x8] sm:$0xff]  ;;  %v26_v7 = vcvt.s32.f32 %v18_v2 }
   0x3   :  { %v24_v8 = vcvt.s32.f32 %v16_v6 }
   0x4   :  { %47 = vperm.xlu1 %2070, %v25_v4   ;;  %37 = vperm.xlu0 %2069, %v23_v5  }
   0x5   :  { %10 = vsyncpa [#allocation5], 0  ;;  %v20_v9 = vld [vmem:[%s2948_s0 + $0x28] sm:$0xff]  ;;  %v19_v10 = vld [vmem:[%s2948_s0 + $0x20] sm:$0xff]  ;;  %v2155_v17 = vmov 1   ;;  %v2156_v18 = vmov 2  }
   0x6   :  { %v28_v11 = vcvt.s32.f32 %v20_v9  ;;  %v27_v12 = vcvt.s32.f32 %v19_v10  ;;  %v22_v13 = vld [vmem:[%s2948_s0 + $0x38] sm:$0xff]  ;;  %v21_v14 = vld [vmem:[%s2948_s0 + $0x30] sm:$0xff]  ;;  %v2157_v19 = vmov 3   ;;  %v2215_v20 = vld [vmem:[%s2949_s1] ss:$0 sm:$0xff]  ;;  %s2165_s11 = smov [#allocation4]  }
   0x7   :  { %v30_v15 = vcvt.s32.f32 %v22_v13  ;;  %v29_v16 = vcvt.s32.f32 %v21_v14  ;;  %v1956_v36 = vld [vmem:[%s2949_s1 + $0x1] ss:$0 sm:$0xff]  ;;  %v1957_v55 = vld [vmem:[%s2949_s1 + $0x2] ss:$0 sm:$0xff]  ;;  %s1940_s12 = sshll.u32 %s2165_s11, 4  ;;  %s1941_s12 = int_to_ptr.vmem [resolvable:$true] %s1940_s12 }
   0x8   :  { %52 = vperm.xlu1 %2070, %v26_v7   ;;  %42 = vperm.xlu0 %2069, %v24_v8  }
   0xc   :  { %62 = vperm.xlu1 %2070, %v28_v11   ;;  %57 = vperm.xlu0 %2069, %v27_v12  }
  0x10   :  { %72 = vperm.xlu1 %2070, %v30_v15   ;;  %67 = vperm.xlu0 %2069, %v29_v16  }
  0x14   :  { %2072 = vset.pattern.permute.xlu1 %v2155_v17  ;;  %2071 = vset.pattern.permute.xlu0 %v2155_v17 }
  0x15   :  { %94 = vperm.xlu1 %2072, %v24_v8   ;;  %90 = vperm.xlu0 %2071, %v23_v5  }
  0x19   :  { %98 = vperm.xlu1 %2072, %v25_v4   ;;  %102 = vperm.xlu0 %2071, %v26_v7  }
  0x1d   :  { %106 = vperm.xlu1 %2072, %v27_v12   ;;  %110 = vperm.xlu0 %2071, %v28_v11  }
  0x21   :  { %114 = vperm.xlu1 %2072, %v29_v16   ;;  %118 = vperm.xlu0 %2071, %v30_v15  }
  0x25   :  { %2073 = vset.pattern.permute.xlu1 %v2156_v18  ;;  %2074 = vset.pattern.permute.xlu0 %v2156_v18 }
  0x26   :  { %144 = vperm.xlu1 %2073, %v23_v5   ;;  %148 = vperm.xlu0 %2074, %v24_v8  }
  0x2a   :  { %152 = vperm.xlu1 %2073, %v25_v4   ;;  %160 = vperm.xlu0 %2074, %v27_v12  }
  0x2e   :  { %156 = vperm.xlu1 %2073, %v26_v7   ;;  %168 = vperm.xlu0 %2074, %v29_v16  }
  0x32   :  { %164 = vperm.xlu1 %2073, %v28_v11   ;;  %2075 = vset.pattern.permute.xlu0 %v2157_v19 }
  0x33   :  { %198 = vperm.xlu0 %2075, %v23_v5   ;;  %v2238_v5 = vld [vmem:[%s2949_s1 + $0x3] ss:$0 sm:$0xff] }
  0x36   :  { %172 = vperm.xlu1 %2073, %v30_v15  }
  0x37   :  { %210 = vperm.xlu0 %2075, %v26_v7  }
  0x3a   :  { %2076 = vset.pattern.permute.xlu1 %v2157_v19 }
  0x3b   :  { %202 = vperm.xlu1 %2076, %v24_v8   ;;  %218 = vperm.xlu0 %2075, %v28_v11  }
  0x3f   :  { %206 = vperm.xlu1 %2076, %v25_v4   ;;  %226 = vperm.xlu0 %2075, %v30_v15  }
  0x43   :  { %214 = vperm.xlu1 %2076, %v27_v12  }
  0x47   :  { %222 = vperm.xlu1 %2076, %v29_v16  }
  0x7f   :  { %v48_v21 = vpop.permute.xlu1 %47  ;;  %v38_v22 = vpop.permute.xlu0 %37 }
  0x80   :  { %v83_v23 = vmul.f32 %v2215_v20, %v48_v21  ;;  %v81_v2 = vmul.f32 %v2215_v20, %v38_v22 }
  0x83   :  { %v53_v24 = vpop.permute.xlu1 %52  ;;  %v43_v25 = vpop.permute.xlu0 %42 }
  0x84   :  { %v84_v13 = vmul.f32 %v2215_v20, %v53_v24 }
  0x87   :  { %v63_v26 = vpop.permute.xlu1 %62  ;;  %v58_v27 = vpop.permute.xlu0 %57 }
  0x88   :  { %v86_v28 = vmul.f32 %v2215_v20, %v63_v26  ;;  %v85_v29 = vmul.f32 %v2215_v20, %v58_v27 }
  0x8b   :  { %v73_v30 = vpop.permute.xlu1 %72  ;;  %v68_v31 = vpop.permute.xlu0 %67 }
  0x8c   :  { %v88_v32 = vmul.f32 %v2215_v20, %v73_v30  ;;  %v87_v33 = vmul.f32 %v2215_v20, %v68_v31 }
  0x90   :  { %v95_v34 = vpop.permute.xlu1 %94  ;;  %v91_v35 = vpop.permute.xlu0 %90 }
  0x91   :  { %v127_v62 = vmul.f32 %v1956_v36, %v91_v35  ;;  %v128_v16 = vmul.f32 %v1956_v36, %v95_v34 }
  0x93   :  { %v135_v6 = vadd.f32 %v127_v62, %v81_v2  ;;  %v2161_v62 = vmov 2102212464  }
  0x94   :  { %v99_v37 = vpop.permute.xlu1 %98  ;;  %v103_v38 = vpop.permute.xlu0 %102 }
  0x95   :  { %v129_v39 = vmul.f32 %v1956_v36, %v99_v37  ;;  %v130_v8 = vmul.f32 %v1956_v36, %v103_v38 }
  0x97   :  { %v137_v40 = vadd.f32 %v129_v39, %v83_v23  ;;  %v138_v19 = vadd.f32 %v130_v8, %v84_v13  ;;  %v82_v23 = vmul.f32 %v2215_v20, %v43_v25 }
  0x98   :  { %v107_v41 = vpop.permute.xlu1 %106  ;;  %v111_v42 = vpop.permute.xlu0 %110 }
  0x99   :  { %v131_v43 = vmul.f32 %v1956_v36, %v107_v41  ;;  %v132_v44 = vmul.f32 %v1956_v36, %v111_v42  ;;  %v136_v31 = vadd.f32 %v128_v16, %v82_v23 }
  0x9b   :  { %v139_v45 = vadd.f32 %v131_v43, %v85_v29  ;;  %v140_v46 = vadd.f32 %v132_v44, %v86_v28 }
  0x9c   :  { %v115_v47 = vpop.permute.xlu1 %114  ;;  %v119_v48 = vpop.permute.xlu0 %118 }
  0x9d   :  { %v133_v49 = vmul.f32 %v1956_v36, %v115_v47  ;;  %v134_v50 = vmul.f32 %v1956_v36, %v119_v48 }
  0x9f   :  { %v141_v51 = vadd.f32 %v133_v49, %v87_v33  ;;  %v142_v52 = vadd.f32 %v134_v50, %v88_v32 }
  0xa1   :  { %v145_v53 = vpop.permute.xlu1 %144  ;;  %v149_v54 = vpop.permute.xlu0 %148 }
  0xa2   :  { %v181_v3 = vmul.f32 %v1957_v55, %v145_v53  ;;  %v182_v26 = vmul.f32 %v1957_v55, %v149_v54  ;;  %v2158_v53 = vmov 683565275  }
  0xa4   :  { %v189_v11 = vadd.f32 %v181_v3, %v135_v6  ;;  %v190_v36 = vadd.f32 %v182_v26, %v136_v31 }
  0xa5   :  { %v153_v56 = vpop.permute.xlu1 %152  ;;  %v161_v57 = vpop.permute.xlu0 %160 }
  0xa6   :  { %v183_v58 = vmul.f32 %v1957_v55, %v153_v56  ;;  %v185_v59 = vmul.f32 %v1957_v55, %v161_v57 }
  0xa8   :  { %v2228_v60 = vadd.f32 %v183_v58, %v137_v40  ;;  %v2230_v61 = vadd.f32 %v185_v59, %v139_v45  ;;  %v2160_v58 = vmov 2131351028  }
  0xa9   :  { %v157_v63 = vpop.permute.xlu1 %156  ;;  %v169_v0 = vpop.permute.xlu0 %168 }
  0xaa   :  { %v187_v1 = vmul.f32 %v1957_v55, %v169_v0  ;;  %v184_v14 = vmul.f32 %v1957_v55, %v157_v63  ;;  %v2162_v0 = vmov 920167782  }
  0xac   :  { %v2233_v4 = vadd.f32 %v187_v1, %v141_v51  ;;  %v192_v29 = vadd.f32 %v184_v14, %v138_v19 }
  0xad   :  { %v165_v7 = vpop.permute.xlu1 %164 }
  0xae   :  { %v186_v9 = vmul.f32 %v1957_v55, %v165_v7  ;;  %v199_v10 = vpop.permute.xlu0 %198 }
  0xaf   :  { %v235_v12 = vmul.f32 %v2238_v5, %v199_v10 }
  0xb0   :  { %v2242_v15 = vadd.f32 %v186_v9, %v140_v46  ;;  %v2163_v9 = vmov 1326507024  }
  0xb1   :  { %v2244_v17 = vadd.f32 %v235_v12, %v189_v11  ;;  %v173_v18 = vpop.permute.xlu1 %172 }
  0xb2   :  { %v188_v21 = vmul.f32 %v1957_v55, %v173_v18  ;;  %v211_v22 = vpop.permute.xlu0 %210  ;;  %v2159_v55 = vmov 2475754826  }
  0xb3   :  { %v251_v27 = vand.u32 2147483647, %v2244_v17  ;;  %v254_v28 = vand.u32 2139095040, %v2244_v17  ;;  %v238_v24 = vmul.f32 %v2238_v5, %v211_v22  ;;  %vm253_vm14 = vcmp.lt.s32.totalorder %v2244_v17, 0 }
  0xb4   :  { %v2249_v30 = vadd.f32 %v188_v21, %v142_v52 }
  0xb5   :  { %v255_v32 = vshrl.u32 %v254_v28, 23  ;;  %v258_v33 = vand.u32 8388607, %v251_v27  ;;  %v2254_v34 = vadd.f32 %v238_v24, %v192_v29  ;;  %vm2337_vm13 = vcmp.le.f32.partialorder %v251_v27, 0.7853982 }
  0xb6   :  { %v203_v35 = vpop.permute.xlu1 %202 }
  0xb7   :  { %v1959_v20 = vadd.s32 4294967169, %v255_v32  ;;  %v236_v25 = vmul.f32 %v2238_v5, %v203_v35  ;;  %v560_v37 = vand.u32 2147483647, %v2254_v34  ;;  %v563_v38 = vand.u32 2139095040, %v2254_v34 }
  0xb8   :  { %v259_v41 = vor.u32 8388608, %v258_v33 }
  0xb9   :  { %v261_v39 = vadd.s32 1, %v1959_v20  ;;  %v2259_v40 = vadd.f32 %v236_v25, %v190_v36  ;;  %v564_v42 = vshrl.u32 %v563_v38, 23  ;;  %v567_v43 = vand.u32 8388607, %v560_v37 }
  0xba   :  { %v2264_v49 = vshll.u32 %v259_v41, 8 }
  0xbb   :  { %vm262_vm0 = vcmp.gt.s32.totalorder %v261_v39, 0  ;;  %v357_v44 = vand.u32 2139095040, %v2259_v40  ;;  %v1971_v46 = vadd.s32 4294967169, %v564_v42  ;;  %v568_v50 = vor.u32 8388608, %v567_v43 }
  0xbc   :  { %v263_v45 = vsel %vm262_vm0, %v261_v39, 0  ;;  %v354_v25 = vand.u32 2147483647, %v2259_v40 }
  0xbd   :  { %v264_v47 = vshrl.u32 %v263_v45, 5  ;;  %v265_v48 = vand.u32 31, %v263_v45  ;;  %v358_v51 = vshrl.u32 %v357_v44, 23  ;;  %v570_v57 = vadd.s32 1, %v1971_v46 }
  0xbe   :  { %v608_v45 = vshll.u32 %v568_v50, 8 }
  0xbf   :  { %v266_v52 = vsub.s32 32, %v265_v48  ;;  %v268_v54 = vshll.u32 %v2158_v53, %v265_v48  ;;  %v271_v56 = vshll.u32 %v2159_v55, %v265_v48  ;;  %v274_v59 = vshll.u32 %v2160_v58, %v265_v48 }
  0xc0   :  { %v277_v63 = vshll.u32 %v2161_v62, %v265_v48  ;;  %v280_v1 = vshll.u32 %v2162_v0, %v265_v48  ;;  %vm283_vm1 = vcmp.lt.s32.totalorder %v264_v47, 1  ;;  %vm284_vm2 = vcmp.lt.s32.totalorder %v264_v47, 2 }
  0xc1   :  { %v269_v2 = vshrl.u32 %v2159_v55, %v266_v52  ;;  %v272_v3 = vshrl.u32 %v2160_v58, %v266_v52  ;;  %v275_v6 = vshrl.u32 %v2161_v62, %v266_v52  ;;  %v267_v7 = vshrl.u32 %v2158_v53, %v266_v52 }
  0xc2   :  { %v278_v8 = vshrl.u32 %v2162_v0, %v266_v52  ;;  %v281_v10 = vshrl.u32 %v2163_v9, %v266_v52  ;;  %vm285_vm3 = vcmp.lt.s32.totalorder %v264_v47, 3  ;;  %vm571_vm4 = vcmp.gt.s32.totalorder %v570_v57, 0 }
  0xc3   :  { %v270_v11 = vor.u32 %v269_v2, %v268_v54  ;;  %v273_v12 = vor.u32 %v272_v3, %v271_v56  ;;  %v276_v13 = vor.u32 %v275_v6, %v274_v59  ;;  %vm286_vm5 = vcmp.lt.s32.totalorder %v264_v47, 4 }
  0xc4   :  { %v279_v14 = vor.u32 %v278_v8, %v277_v63  ;;  %v282_v16 = vor.u32 %v281_v10, %v280_v1  ;;  %v572_v18 = vsel %vm571_vm4, %v570_v57, 0  ;;  %v1963_v46 = vadd.s32 4294967169, %v358_v51 }
  0xc5   :  { %v287_v19 = vsel %vm283_vm1, %v267_v7, %v270_v11  ;;  %v288_v21 = vsel %vm286_vm5, %v276_v13, 2102212464  ;;  %v291_v22 = vsel %vm283_vm1, %v270_v11, %v273_v12  ;;  %v295_v23 = vsel %vm283_vm1, %v273_v12, %v276_v13 }
  0xc6   :  { %v289_v26 = vsel %vm285_vm3, %v273_v12, %v288_v21  ;;  %v292_v28 = vsel %vm286_vm5, %v279_v14, 920167782  ;;  %v296_v29 = vsel %vm286_vm5, %v282_v16, 1326507024  ;;  %v573_v24 = vshrl.u32 %v572_v18, 5 }
  0xc7   :  { %v290_v31 = vsel %vm284_vm2, %v287_v19, %v289_v26  ;;  %v293_v32 = vsel %vm285_vm3, %v276_v13, %v292_v28  ;;  %v297_v33 = vsel %vm285_vm3, %v279_v14, %v296_v29  ;;  %v574_v35 = vand.u32 31, %v572_v18 }
  0xc8   :  { %v294_v36 = vsel %vm284_vm2, %v291_v22, %v293_v32  ;;  %v298_v20 = vsel %vm284_vm2, %v295_v23, %v297_v33  ;;  %v306_v43 = vmul.u32 %v2264_v49, %v290_v31  ;;  %vm592_vm6 = vcmp.lt.s32.totalorder %v573_v24, 1 }
  0xc9   :  { %v2288_v38 = vmul.u32.u64.low %v2264_v49, %v298_v20  ;;  %v2289_v39 = vmul.u32.u64.high %v2264_v49, %v298_v20, %v2288_v38  ;;  %v2292_v41 = vmul.u32.u64.low %v2264_v49, %v294_v36  ;;  %v2293_v42 = vmul.u32.u64.high %v2264_v49, %v294_v36, %v2292_v41  ;;  %v219_v36 = vpop.permute.xlu0 %218 }
  0xca   :  { %v575_v44 = vsub.s32 32, %v574_v35  ;;  %v577_v48 = vshll.u32 %v2158_v53, %v574_v35  ;;  %v580_v47 = vshll.u32 %v2159_v55, %v574_v35  ;;  %v583_v52 = vshll.u32 %v2160_v58, %v574_v35 }
  0xcb   :  { %v586_v59 = vshll.u32 %v2161_v62, %v574_v35  ;;  %vm308_vm7 = vc.u32 %v2289_v39, %v2292_v41  ;;  %v309_v49 = vadd.s32 1, %v2293_v42  ;;  %v589_v51 = vshll.u32 %v2162_v0, %v574_v35 }
  0xcc   :  { %v578_v54 = vshrl.u32 %v2159_v55, %v575_v44  ;;  %v581_v56 = vshrl.u32 %v2160_v58, %v575_v44  ;;  %v584_v57 = vshrl.u32 %v2161_v62, %v575_v44  ;;  %v587_v50 = vshrl.u32 %v2162_v0, %v575_v44 }
  0xcd   :  { %v590_v3 = vshrl.u32 %v2163_v9, %v575_v44  ;;  %v310_v6 = vsel %vm308_vm7, %v309_v49, %v2293_v42  ;;  %vm593_vm8 = vcmp.lt.s32.totalorder %v573_v24, 2  ;;  %vm595_vm9 = vcmp.lt.s32.totalorder %v573_v24, 4 }
  0xce   :  { %v579_v63 = vor.u32 %v578_v54, %v577_v48  ;;  %v582_v1 = vor.u32 %v581_v56, %v580_v47  ;;  %v585_v2 = vor.u32 %v584_v57, %v583_v52  ;;  %v588_v7 = vor.u32 %v587_v50, %v586_v59 }
  0xcf   :  { %v311_v8 = vadd.s32 %v310_v6, %v306_v43  ;;  %v576_v10 = vshrl.u32 %v2158_v53, %v575_v44  ;;  %v591_v11 = vor.u32 %v590_v3, %v589_v51  ;;  %vm594_vm10 = vcmp.lt.s32.totalorder %v573_v24, 3 }
  0xd0   :  { %v597_v12 = vsel %vm595_vm9, %v585_v2, 2102212464  ;;  %v600_v13 = vsel %vm592_vm6, %v579_v63, %v582_v1  ;;  %v601_v14 = vsel %vm595_vm9, %v588_v7, 920167782  ;;  %v604_v16 = vsel %vm592_vm6, %v582_v1, %v585_v2 }
  0xd1   :  { %v312_v18 = vadd.s32 536870912, %v311_v8  ;;  %v596_v19 = vsel %vm592_vm6, %v576_v10, %v579_v63  ;;  %v602_v21 = vsel %vm594_vm10, %v585_v2, %v601_v14  ;;  %v605_v22 = vsel %vm595_vm9, %v591_v11, 1326507024 }
  0xd2   :  { %v598_v23 = vsel %vm594_vm10, %v582_v1, %v597_v12  ;;  %v603_v26 = vsel %vm593_vm8, %v600_v13, %v602_v21  ;;  %v606_v28 = vsel %vm594_vm10, %v588_v7, %v605_v22  ;;  %v364_v29 = vadd.s32 1, %v1963_v46 }
  0xd3   :  { %v313_v31 = vshrl.u32 %v312_v18, 30  ;;  %v607_v32 = vsel %vm593_vm8, %v604_v16, %v606_v28  ;;  %v2317_v33 = vmul.u32.u64.low %v608_v45, %v603_v26  ;;  %v2318_v35 = vmul.u32.u64.high %v608_v45, %v603_v26, %v2317_v33 }
  0xd4   :  { %v2321_v20 = vmul.u32.u64.low %v608_v45, %v607_v32  ;;  %v2322_v38 = vmul.u32.u64.high %v608_v45, %v607_v32, %v2321_v20  ;;  %vm365_vm11 = vcmp.gt.s32.totalorder %v364_v29, 0  ;;  %v599_v43 = vsel %vm593_vm8, %v596_v19, %v598_v23 }
  0xd5   :  { %v314_v42 = vshll.u32 %v313_v31, 30  ;;  %v366_v44 = vsel %vm365_vm11, %v364_v29, 0  ;;  %v361_v48 = vand.u32 8388607, %v354_v25  ;;  %v240_v46 = vmul.f32 %v2238_v5, %v219_v36 }
  0xd6   :  { %v618_v52 = vadd.s32 1, %v2318_v35  ;;  %v368_v54 = vand.u32 31, %v366_v44  ;;  %v615_v56 = vmul.u32 %v608_v45, %v599_v43  ;;  %vm617_vm12 = vc.u32 %v2322_v38, %v2317_v33 }
  0xd7   :  { %v315_v47 = vsub.s32 %v311_v8, %v314_v42  ;;  %v362_v24 = vor.u32 8388608, %v361_v48  ;;  %v2333_v50 = vadd.f32 %v240_v46, %v2242_v15  ;;  %v337_v3 = vsub.s32 4, %v313_v31 }
  0xd8   :  { %v619_v59 = vsel %vm617_vm12, %v618_v52, %v2318_v35  ;;  %v369_v63 = vsub.s32 32, %v368_v54  ;;  %v307_v6 = vadd.s32 %v2292_v41, %v2289_v39  ;;  %v2349_v11 = vshrl.u32 %v366_v44, 5 }
  0xd9   :  { %v317_v57 = vsub.s32 0, %v315_v47  ;;  %v620_v49 = vadd.s32 %v619_v59, %v615_v56  ;;  %v2346_v15 = vshll.u32 %v362_v24, 8  ;;  %v766_v8 = vand.u32 2147483647, %v2333_v50 }
  0xda   :  { %v372_v27 = vshrl.u32 %v2159_v55, %v369_v63  ;;  %v769_v12 = vand.u32 2139095040, %v2333_v50  ;;  %v375_v14 = vshrl.u32 %v2160_v58, %v369_v63  ;;  %v378_v16 = vshrl.u32 %v2161_v62, %v369_v63 }
  0xdb   :  { %v1960_v51 = vmin.u32 %v317_v57, %v315_v47  ;;  %v621_v1 = vadd.s32 536870912, %v620_v49  ;;  %v381_v39 = vshrl.u32 %v2162_v0, %v369_v63  ;;  %v338_v41 = vsel %vm253_vm14, %v337_v3, %v313_v31 }
  0xdc   :  { %v371_v18 = vshll.u32 %v2158_v53, %v368_v54  ;;  %v374_v19 = vshll.u32 %v2159_v55, %v368_v54  ;;  %v377_v23 = vshll.u32 %v2160_v58, %v368_v54  ;;  %v380_v26 = vshll.u32 %v2161_v62, %v368_v54 }
  0xdd   :  { %v319_v45 = vclz %v1960_v51  ;;  %v2344_v7 = vshrl.u32 %v621_v1, 30  ;;  %v384_v35 = vshrl.u32 %v2163_v9, %v369_v63  ;;  %v383_v46 = vshll.u32 %v2162_v0, %v368_v54 }
  0xde   :  { %v373_v32 = vor.u32 %v372_v27, %v371_v18  ;;  %v376_v20 = vor.u32 %v375_v14, %v374_v19  ;;  %v379_v31 = vor.u32 %v378_v16, %v377_v23  ;;  %v382_v42 = vor.u32 %v381_v39, %v380_v26 }
  0xdf   :  { %v1961_v10 = vadd.s32 4294967294, %v319_v45  ;;  %v623_v13 = vshll.u32 %v2344_v7, 30  ;;  %v2370_v52 = vsel %vm2337_vm13, 0, %v338_v41  ;;  %v370_v57 = vshrl.u32 %v2158_v53, %v369_v63 }
  0xe0   :  { %vm386_vm0 = vcmp.lt.s32.totalorder %v2349_v11, 1  ;;  %v385_v24 = vor.u32 %v384_v35, %v383_v46  ;;  %vm389_vm1 = vcmp.lt.s32.totalorder %v2349_v11, 4  ;;  %vm562_vm2 = vcmp.lt.s32.totalorder %v2254_v34, 0 }
  0xe1   :  { %vm1962_vm15 = vcmp.lt.s32.totalorder %v1961_v10, 0  ;;  %v2361_v22 = vsub.s32 %v620_v49, %v623_v13  ;;  %v391_v54 = vsel %vm389_vm1, %v379_v31, 2102212464  ;;  %v394_v51 = vsel %vm386_vm0, %v373_v32, %v376_v20 }
  0xe2   :  { %v322_v21 = vsel %vm1962_vm15, 0, %v1961_v10  ;;  %v395_v1 = vsel %vm389_vm1, %v382_v42, 920167782  ;;  %v616_v45 = vadd.s32 %v2317_v33, %v2322_v38  ;;  %vm387_vm3 = vcmp.lt.s32.totalorder %v2349_v11, 2 }
  0xe3   :  { %v323_v28 = vsub.s32 32, %v322_v21  ;;  %v327_v29 = vsub.s32 4294967266, %v322_v21  ;;  %v626_v36 = vsub.s32 0, %v2361_v22  ;;  %v324_v43 = vshll.u32 %v315_v47, %v322_v21 }
  0xe4   :  { %vm388_vm4 = vcmp.lt.s32.totalorder %v2349_v11, 3  ;;  %v390_v10 = vsel %vm386_vm0, %v370_v57, %v373_v32  ;;  %vm2393_vm5 = vcmp.le.f32.partialorder %v560_v37, 0.7853982  ;;  %v398_v16 = vsel %vm386_vm0, %v376_v20, %v379_v31 }
  0xe5   :  { %v325_v44 = vshrl.u32 %v307_v6, %v323_v28  ;;  %v328_v48 = vadd.s32 127, %v327_v29  ;;  %v1972_v56 = vmin.u32 %v626_v36, %v2361_v22  ;;  %v396_v27 = vsel %vm388_vm4, %v379_v31, %v395_v1 }
  0xe6   :  { %v392_v33 = vsel %vm388_vm4, %v376_v20, %v391_v54  ;;  %v397_v38 = vsel %vm387_vm3, %v394_v51, %v396_v27  ;;  %v399_v39 = vsel %vm389_vm1, %v385_v24, 1326507024  ;;  %v646_v21 = vsub.s32 4, %v2344_v7  ;;  %v207_v24 = vpop.permute.xlu1 %206 }
  0xe7   :  { %v326_v59 = vor.u32 %v325_v44, %v324_v43  ;;  %v329_v49 = vshll.u32 %v328_v48, 23  ;;  %v628_v47 = vclz %v1972_v56  ;;  %v400_v23 = vsel %vm388_vm4, %v382_v42, %v399_v39 }
  0xe8   :  { %v2406_v41 = vmul.u32.u64.low %v2346_v15, %v397_v38  ;;  %v2407_v18 = vmul.u32.u64.high %v2346_v15, %v397_v38, %v2406_v41  ;;  %v393_v29 = vsel %vm387_vm3, %v390_v10, %v392_v33  ;;  %v401_v32 = vsel %vm387_vm3, %v398_v16, %v400_v23 }
  0xe9   :  { %v330_v63 = vor.u32 4788187, %v329_v49  ;;  %v333_v3 = vcvt.s32.f32 %v326_v59  ;;  %v1973_v6 = vadd.s32 4294967294, %v628_v47  ;;  %v770_v31 = vshrl.u32 %v769_v12, 23 }
  0xea   :  { %v2418_v36 = vmul.u32.u64.low %v2346_v15, %v401_v32  ;;  %v2419_v20 = vmul.u32.u64.high %v2346_v15, %v401_v32, %v2418_v36  ;;  %v412_v48 = vadd.s32 1, %v2407_v18  ;;  %v647_v11 = vsel %vm562_vm2, %v646_v21, %v2344_v7 }
  0xeb   :  { %v331_v13 = vand.u32 2147483647, %v330_v63  ;;  %vm1974_vm6 = vcmp.lt.s32.totalorder %v1973_v6, 0  ;;  %v1979_v56 = vadd.s32 4294967169, %v770_v31  ;;  %v773_v57 = vand.u32 8388607, %v766_v8 }
  0xec   :  { %v631_v19 = vsel %vm1974_vm6, 0, %v1973_v6  ;;  %v409_v47 = vmul.u32 %v2346_v15, %v393_v29  ;;  %vm411_vm7 = vc.u32 %v2419_v20, %v2406_v41  ;;  %v649_v51 = vsel %vm2393_vm5, 0, %v647_v11 }
  0xed   :  { %v334_v37 = vmul.f32 %v333_v3, %v331_v13  ;;  %v632_v26 = vsub.s32 32, %v631_v19  ;;  %v636_v28 = vsub.s32 4294967266, %v631_v19  ;;  %v633_v43 = vshll.u32 %v2361_v22, %v631_v19 }
  0xee   :  { %v1168_v22 = vadd.s32 3, %v2370_v52  ;;  %v776_v7 = vadd.s32 1, %v1979_v56  ;;  %v413_v2 = vsel %vm411_vm7, %v412_v48, %v2407_v18  ;;  %v237_v63 = vmul.f32 %v2238_v5, %v207_v24 }
  0xef   :  { %v335_v35 = vxor.u32 2147483648, %v334_v37  ;;  %v634_v44 = vshrl.u32 %v616_v45, %v632_v26  ;;  %v637_v42 = vadd.s32 127, %v636_v28  ;;  %v414_v1 = vadd.s32 %v413_v2, %v409_v47 }
  0xf0   :  { %vm777_vm8 = vcmp.gt.s32.totalorder %v776_v7, 0  ;;  %v2444_v45 = vand.u32 3, %v2370_v52  ;;  %v2446_v10 = vand.u32 3, %v1168_v22  ;;  %v1480_v27 = vadd.s32 3, %v649_v51 }
  0xf1   :  { %v336_v46 = vsel %vm253_vm14, %v335_v35, %v334_v37  ;;  %v635_v59 = vor.u32 %v634_v44, %v633_v43  ;;  %v638_v49 = vshll.u32 %v637_v42, 23  ;;  %v778_v6 = vsel %vm777_vm8, %v776_v7, 0 }
  0xf2   :  { %v339_v12 = vsel %vm2337_vm13, %v2244_v17, %v336_v46  ;;  %v415_v13 = vadd.s32 536870912, %v414_v1  ;;  %v780_v33 = vand.u32 31, %v778_v6  ;;  %v774_v16 = vor.u32 8388608, %v773_v57 }
  0xf3   :  { %2077 = vcosq.f32 %v339_v12  ;;  %v639_v54 = vor.u32 4788187, %v638_v49  ;;  %v642_v15 = vcvt.s32.f32 %v635_v59  ;;  %v2449_v18 = vadd.f32 %v237_v63, %v2228_v60 }
  0xf4   :  { %2079 = vsinq.f32 %v339_v12  ;;  %v416_v39 = vshrl.u32 %v415_v13, 30  ;;  %vm349_vm9 = vcmp.eq.s32.totalorder %v2444_v45, 2  ;;  %v781_v19 = vsub.s32 32, %v780_v33 }
  0xf5   :  { %v640_v3 = vand.u32 2147483647, %v639_v54  ;;  %vm346_vm10 = vcmp.eq.s32.totalorder %v2444_v45, 0  ;;  %vm1171_vm11 = vcmp.eq.s32.totalorder %v2446_v10, 0  ;;  %vm1174_vm12 = vcmp.eq.s32.totalorder %v2446_v10, 2 }
  0xf6   :  { %v2455_v52 = vand.u32 3, %v649_v51  ;;  %v2457_v21 = vand.u32 3, %v1480_v27  ;;  %vm356_vm13 = vcmp.lt.s32.totalorder %v2259_v40, 0  ;;  %v417_v23 = vshll.u32 %v416_v39, 30 }
  0xf7   :  { %v643_v38 = vmul.f32 %v642_v15, %v640_v3  ;;  %vm345_vm14 = vcmp.lt.s32.totalorder %v2444_v45, 2  ;;  %vm1170_vm15 = vcmp.lt.s32.totalorder %v2446_v10, 2  ;;  %v2466_v26 = vadd.s32 %v2406_v41, %v2419_v20 }
  0xf8   :  { %v2468_v28 = vshrl.u32 %v778_v6, 5  ;;  %v2470_v29 = vshll.u32 %v774_v16, 8  ;;  %vm343_vm0 = vweird.f32 %v2244_v17  ;;  %v2476_v35 = vsub.s32 %v414_v1, %v417_v23 }
  0xf9   :  { %v644_v37 = vxor.u32 2147483648, %v643_v38  ;;  %v783_v36 = vshll.u32 %v2158_v53, %v780_v33  ;;  %v460_v31 = vand.u32 2139095040, %v2449_v18  ;;  %v784_v41 = vshrl.u32 %v2159_v55, %v781_v19 }
  0xfa   :  { %v787_v20 = vshrl.u32 %v2160_v58, %v781_v19  ;;  %v790_v43 = vshrl.u32 %v2161_v62, %v781_v19  ;;  %vm2485_vm1 = vcmp.le.f32.partialorder %v354_v25, 0.7853982  ;;  %v420_v14 = vsub.s32 0, %v2476_v35 }
  0xfb   :  { %v645_v60 = vsel %vm562_vm2, %v644_v37, %v643_v38  ;;  %v786_v42 = vshll.u32 %v2159_v55, %v780_v33  ;;  %v793_v48 = vshrl.u32 %v2162_v0, %v781_v19  ;;  %v440_v11 = vsub.s32 4, %v416_v39 }
  0xfc   :  { %v648_v32 = vsel %vm2393_vm5, %v2254_v34, %v645_v60  ;;  %v789_v56 = vshll.u32 %v2160_v58, %v780_v33  ;;  %v792_v57 = vshll.u32 %v2161_v62, %v780_v33  ;;  %v795_v12 = vshll.u32 %v2162_v0, %v780_v33 }
  0xfd   :  { %2081 = vcosq.f32 %v648_v32  ;;  %v1964_v25 = vmin.u32 %v420_v14, %v2476_v35  ;;  %v782_v49 = vshrl.u32 %v2158_v53, %v781_v19  ;;  %v796_v24 = vshrl.u32 %v2163_v9, %v781_v19 }
  0xfe   :  { %2083 = vsinq.f32 %v648_v32  ;;  %v785_v7 = vor.u32 %v784_v41, %v783_v36  ;;  %v788_v54 = vor.u32 %v787_v20, %v786_v42  ;;  %v791_v51 = vor.u32 %v790_v43, %v789_v56 }
  0xff   :  { %v422_v63 = vclz %v1964_v25  ;;  %v794_v3 = vor.u32 %v793_v48, %v792_v57  ;;  %v441_v27 = vsel %vm356_vm13, %v440_v11, %v416_v39  ;;  %vm798_vm2 = vcmp.lt.s32.totalorder %v2468_v28, 1 }
 0x100   :  { %v2078_v46 = vpop.eup %2077  ;;  %vm658_vm3 = vcmp.eq.s32.totalorder %v2455_v52, 2  ;;  %vm1486_vm4 = vcmp.eq.s32.totalorder %v2457_v21, 2  ;;  %v797_v16 = vor.u32 %v796_v24, %v795_v12  ;;  %vm655_vm5 = vcmp.eq.s32.totalorder %v2455_v52, 0 }
 0x101   :  { %v2080_v22 = vpop.eup %2079  ;;  %v350_v59 = vxor.u32 2147483648, %v2078_v46  ;;  %v1965_v38 = vadd.s32 4294967294, %v422_v63  ;;  %vm1483_vm6 = vcmp.eq.s32.totalorder %v2457_v21, 0  ;;  %vm800_vm7 = vcmp.lt.s32.totalorder %v2468_v28, 3 }
 0x102   :  { %v347_v47 = vxor.u32 2147483648, %v2080_v22  ;;  %vm801_vm8 = vcmp.lt.s32.totalorder %v2468_v28, 4  ;;  %v806_v17 = vsel %vm798_vm2, %v785_v7, %v788_v54  ;;  %v443_v23 = vsel %vm2485_vm1, 0, %v441_v27 }
 0x103   :  { %v351_v2 = vsel %vm349_vm9, %v350_v59, %v2080_v22  ;;  %v1176_v1 = vsel %vm1174_vm12, %v350_v59, %v2080_v22  ;;  %vm654_vm9 = vcmp.lt.s32.totalorder %v2455_v52, 2  ;;  %v803_v45 = vsel %vm801_vm8, %v791_v51, 2102212464  ;;  %v227_v52 = vpop.permute.xlu0 %226 }
 0x104   :  { %v348_v15 = vsel %vm346_vm10, %v2078_v46, %v347_v47  ;;  %v1173_v6 = vsel %vm1171_vm11, %v2078_v46, %v347_v47  ;;  %vm1482_vm10 = vcmp.lt.s32.totalorder %v2457_v21, 2  ;;  %vm1966_vm11 = vcmp.lt.s32.totalorder %v1965_v38, 0 }
 0x105   :  { %v352_v13 = vsel %vm345_vm14, %v348_v15, %v351_v2  ;;  %v1177_v33 = vsel %vm1170_vm15, %v1173_v6, %v1176_v1  ;;  %v807_v10 = vsel %vm801_vm8, %v794_v3, 920167782  ;;  %vm652_vm12 = vweird.f32 %v2254_v34 }
 0x106   :  { %v353_v37 = vsel %vm343_vm0, nan, %v352_v13  ;;  %v1178_v39 = vsel %vm343_vm0, nan, %v1177_v33  ;;  %v425_v19 = vsel %vm1966_vm11, 0, %v1965_v38  ;;  %vm799_vm14 = vcmp.lt.s32.totalorder %v2468_v28, 2 }
 0x107   :  { %1907 = vst [vmem:[#allocation2] sm:$0xff] %v353_v37  ;;  %1915 = vst [vmem:[#allocation4] sm:$0xff] %v1178_v39  ;;  %v808_v60 = vsel %vm800_vm7, %v791_v51, %v807_v10  ;;  %v426_v32 = vsub.s32 32, %v425_v19  ;;  %v430_v36 = vsub.s32 4294967266, %v425_v19  ;;  %v802_v41 = vsel %vm798_vm2, %v782_v49, %v785_v7 }
 0x108   :  { %v810_v20 = vsel %vm798_vm2, %v788_v54, %v791_v51  ;;  %v427_v43 = vshll.u32 %v2476_v35, %v425_v19  ;;  %v804_v14 = vsel %vm800_vm7, %v788_v54, %v803_v45  ;;  %v809_v42 = vsel %vm799_vm14, %v806_v17, %v808_v60 }
 0x109   :  { %v811_v48 = vsel %vm801_vm8, %v797_v16, 1326507024  ;;  %v428_v11 = vshrl.u32 %v2466_v26, %v426_v32  ;;  %v431_v56 = vadd.s32 127, %v430_v36  ;;  %v461_v12 = vshrl.u32 %v460_v31, 23 }
 0x10a   :  { %v2082_v46 = vpop.eup %2081  ;;  %v812_v57 = vsel %vm800_vm7, %v794_v3, %v811_v48  ;;  %v2556_v25 = vmul.u32.u64.low %v2470_v29, %v809_v42  ;;  %v2557_v49 = vmul.u32.u64.high %v2470_v29, %v809_v42, %v2556_v25  ;;  %v805_v15 = vsel %vm799_vm14, %v802_v41, %v804_v14 }
 0x10b   :  { %v2084_v35 = vpop.eup %2083  ;;  %v659_v22 = vxor.u32 2147483648, %v2082_v46  ;;  %v813_v59 = vsel %vm799_vm14, %v810_v20, %v812_v57  ;;  %v429_v47 = vor.u32 %v428_v11, %v427_v43  ;;  %v432_v26 = vshll.u32 %v431_v56, 23 }
 0x10c   :  { %v656_v24 = vxor.u32 2147483648, %v2084_v35  ;;  %v1967_v7 = vadd.s32 4294967169, %v461_v12  ;;  %v2565_v51 = vmul.u32.u64.low %v2470_v29, %v813_v59  ;;  %v2566_v2 = vmul.u32.u64.high %v2470_v29, %v813_v59, %v2565_v51 }
 0x10d   :  { %v660_v54 = vsel %vm658_vm3, %v659_v22, %v2084_v35  ;;  %v1488_v31 = vsel %vm1486_vm4, %v659_v22, %v2084_v35  ;;  %v433_v3 = vor.u32 4788187, %v432_v26  ;;  %v436_v13 = vcvt.s32.f32 %v429_v47 }
 0x10e   :  { %v657_v1 = vsel %vm655_vm5, %v2082_v46, %v656_v24  ;;  %v1485_v63 = vsel %vm1483_vm6, %v2082_v46, %v656_v24  ;;  %v824_v33 = vadd.s32 1, %v2557_v49  ;;  %v467_v39 = vadd.s32 1, %v1967_v7 }
 0x10f   :  { %v661_v6 = vsel %vm654_vm9, %v657_v1, %v660_v54  ;;  %v1489_v27 = vsel %vm1482_vm10, %v1485_v63, %v1488_v31  ;;  %v434_v37 = vand.u32 2147483647, %v433_v3  ;;  %v821_v28 = vmul.u32 %v2470_v29, %v805_v15 }
 0x110   :  { %v662_v38 = vsel %vm652_vm12, nan, %v661_v6  ;;  %v1490_v16 = vsel %vm652_vm12, nan, %v1489_v27  ;;  %vm823_vm15 = vc.u32 %v2566_v2, %v2556_v25  ;;  %vm468_vm0 = vcmp.gt.s32.totalorder %v467_v39, 0 }
 0x111   :  { %1910 = vst [vmem:[#allocation2 + $0x18] sm:$0xff] %v662_v38  ;;  %1918 = vst [vmem:[#allocation4 + $0x18] sm:$0xff] %v1490_v16  ;;  %v437_v21 = vmul.f32 %v436_v13, %v434_v37  ;;  %v825_v45 = vsel %vm823_vm15, %v824_v33, %v2557_v49  ;;  %v1272_v17 = vadd.s32 3, %v443_v23  ;;  %v457_v19 = vand.u32 2147483647, %v2449_v18 }
 0x112   :  { %v826_v10 = vadd.s32 %v825_v45, %v821_v28  ;;  %v469_v34 = vsel %vm468_vm0, %v467_v39, 0  ;;  %v242_v36 = vmul.f32 %v2238_v5, %v227_v52  ;;  %v2591_v20 = vand.u32 3, %v443_v23 }
 0x113   :  { %v438_v60 = vxor.u32 2147483648, %v437_v21  ;;  %v471_v32 = vand.u32 31, %v469_v34  ;;  %v2596_v42 = vand.u32 3, %v1272_v17  ;;  %v464_v46 = vand.u32 8388607, %v457_v19 }
 0x114   :  { %v827_v41 = vadd.s32 536870912, %v826_v10  ;;  %v2605_v23 = vadd.f32 %v242_v36, %v2249_v30  ;;  %v470_v47 = vshrl.u32 %v469_v34, 5  ;;  %vm449_vm4 = vcmp.eq.s32.totalorder %v2591_v20, 0 }
 0x115   :  { %v439_v29 = vsel %vm356_vm13, %v438_v60, %v437_v21  ;;  %v472_v43 = vsub.s32 32, %v471_v32  ;;  %v474_v44 = vshll.u32 %v2158_v53, %v471_v32  ;;  %v477_v35 = vshll.u32 %v2159_v55, %v471_v32 }
 0x116   :  { %v442_v14 = vsel %vm2485_vm1, %v2259_v40, %v439_v29  ;;  %v2598_v48 = vshrl.u32 %v827_v41, 30  ;;  %v480_v22 = vshll.u32 %v2160_v58, %v471_v32  ;;  %v483_v59 = vshll.u32 %v2161_v62, %v471_v32 }
 0x117   :  { %2085 = vcosq.f32 %v442_v14  ;;  %v475_v11 = vshrl.u32 %v2159_v55, %v472_v43  ;;  %v478_v56 = vshrl.u32 %v2160_v58, %v472_v43  ;;  %v481_v12 = vshrl.u32 %v2161_v62, %v472_v43 }
 0x118   :  { %2087 = vsinq.f32 %v442_v14  ;;  %v829_v57 = vshll.u32 %v2598_v48, 30  ;;  %v484_v49 = vshrl.u32 %v2162_v0, %v472_v43  ;;  %v486_v30 = vshll.u32 %v2162_v0, %v471_v32 }
 0x119   :  { %v487_v26 = vshrl.u32 %v2163_v9, %v472_v43  ;;  %v476_v7 = vor.u32 %v475_v11, %v474_v44  ;;  %v479_v54 = vor.u32 %v478_v56, %v477_v35  ;;  %v482_v31 = vor.u32 %v481_v12, %v480_v22 }
 0x11a   :  { %v2614_v24 = vsub.s32 %v826_v10, %v829_v57  ;;  %v485_v51 = vor.u32 %v484_v49, %v483_v59  ;;  %v465_v3 = vor.u32 8388608, %v464_v46  ;;  %v975_v15 = vand.u32 2139095040, %v2605_v23 }
 0x11b   :  { %v488_v63 = vor.u32 %v487_v26, %v486_v30  ;;  %vm452_vm13 = vcmp.eq.s32.totalorder %v2591_v20, 2  ;;  %vm1278_vm1 = vcmp.eq.s32.totalorder %v2596_v42, 2  ;;  %v473_v27 = vshrl.u32 %v2158_v53, %v472_v43 }
 0x11c   :  { %v832_v1 = vsub.s32 0, %v2614_v24  ;;  %vm489_vm2 = vcmp.lt.s32.totalorder %v470_v47, 1  ;;  %vm492_vm3 = vcmp.lt.s32.totalorder %v470_v47, 4  ;;  %vm1275_vm5 = vcmp.eq.s32.totalorder %v2596_v42, 0 }
 0x11d   :  { %vm491_vm6 = vcmp.lt.s32.totalorder %v470_v47, 3  ;;  %v494_v13 = vsel %vm492_vm3, %v482_v31, 2102212464  ;;  %v497_v33 = vsel %vm489_vm2, %v476_v7, %v479_v54  ;;  %v498_v38 = vsel %vm492_vm3, %v485_v51, 920167782 }
 0x11e   :  { %v1980_v6 = vmin.u32 %v832_v1, %v2614_v24  ;;  %vm448_vm7 = vcmp.lt.s32.totalorder %v2591_v20, 2  ;;  %vm1274_vm8 = vcmp.lt.s32.totalorder %v2596_v42, 2  ;;  %v499_v37 = vsel %vm491_vm6, %v482_v31, %v498_v38 }
 0x11f   :  { %v501_v39 = vsel %vm489_vm2, %v479_v54, %v482_v31  ;;  %v502_v28 = vsel %vm492_vm3, %v488_v63, 1326507024  ;;  %vm446_vm9 = vweird.f32 %v2259_v40  ;;  %v822_v52 = vadd.s32 %v2556_v25, %v2566_v2 }
 0x120   :  { %v834_v16 = vclz %v1980_v6  ;;  %vm490_vm10 = vcmp.lt.s32.totalorder %v470_v47, 2  ;;  %v493_v21 = vsel %vm489_vm2, %v473_v27, %v476_v7  ;;  %v505_v45 = vshll.u32 %v465_v3, 8  ;;  %v215_v3 = vpop.permute.xlu1 %214 }
 0x121   :  { %vm768_vm11 = vcmp.lt.s32.totalorder %v2333_v50, 0  ;;  %v495_v10 = vsel %vm491_vm6, %v479_v54, %v494_v13  ;;  %v500_v34 = vsel %vm490_vm10, %v497_v33, %v499_v37  ;;  %v503_v60 = vsel %vm491_vm6, %v485_v51, %v502_v28 }
 0x122   :  { %v1981_v17 = vadd.s32 4294967294, %v834_v16  ;;  %v504_v32 = vsel %vm490_vm10, %v501_v39, %v503_v60  ;;  %v2640_v36 = vmul.u32.u64.low %v505_v45, %v500_v34  ;;  %v2641_v41 = vmul.u32.u64.high %v505_v45, %v500_v34, %v2640_v36 }
 0x123   :  { %v976_v25 = vshrl.u32 %v975_v15, 23  ;;  %v852_v29 = vsub.s32 4, %v2598_v48  ;;  %v2645_v43 = vmul.u32.u64.low %v505_v45, %v504_v32  ;;  %v2646_v14 = vmul.u32.u64.high %v505_v45, %v504_v32, %v2645_v43 }
 0x124   :  { %v2086_v2 = vpop.eup %2085  ;;  %vm1982_vm12 = vcmp.lt.s32.totalorder %v1981_v17, 0  ;;  %v496_v57 = vsel %vm490_vm10, %v493_v21, %v495_v10  ;;  %v515_v26 = vadd.s32 1, %v2641_v41  ;;  %v239_v37 = vmul.f32 %v2238_v5, %v215_v3 }
 0x125   :  { %v2088_v46 = vpop.eup %2087  ;;  %v453_v11 = vxor.u32 2147483648, %v2086_v2  ;;  %v837_v56 = vsel %vm1982_vm12, 0, %v1981_v17  ;;  %v1987_v44 = vadd.s32 4294967169, %v976_v25  ;;  %v512_v63 = vmul.u32 %v505_v45, %v496_v57 }
 0x126   :  { %v450_v12 = vxor.u32 2147483648, %v2088_v46  ;;  %v838_v35 = vsub.s32 32, %v837_v56  ;;  %v839_v22 = vshll.u32 %v2614_v24, %v837_v56  ;;  %v842_v59 = vsub.s32 4294967266, %v837_v56 }
 0x127   :  { %v454_v49 = vsel %vm452_vm13, %v453_v11, %v2088_v46  ;;  %v1280_v30 = vsel %vm1278_vm1, %v453_v11, %v2088_v46  ;;  %v982_v7 = vadd.s32 1, %v1987_v44  ;;  %vm514_vm14 = vc.u32 %v2646_v14, %v2640_v36 }
 0x128   :  { %v451_v54 = vsel %vm449_vm4, %v2086_v2, %v450_v12  ;;  %v1277_v47 = vsel %vm1275_vm5, %v2086_v2, %v450_v12  ;;  %v840_v31 = vshrl.u32 %v822_v52, %v838_v35  ;;  %v843_v51 = vadd.s32 127, %v842_v59 }
 0x129   :  { %v455_v24 = vsel %vm448_vm7, %v451_v54, %v454_v49  ;;  %v1281_v1 = vsel %vm1274_vm8, %v1277_v47, %v1280_v30  ;;  %v853_v20 = vsel %vm768_vm11, %v852_v29, %v2598_v48  ;;  %v516_v42 = vsel %vm514_vm14, %v515_v26, %v2641_v41 }
 0x12a   :  { %v456_v15 = vsel %vm446_vm9, nan, %v455_v24  ;;  %v1282_v6 = vsel %vm446_vm9, nan, %v1281_v1  ;;  %v841_v27 = vor.u32 %v840_v31, %v839_v22  ;;  %v844_v13 = vshll.u32 %v843_v51, 23 }
 0x12b   :  { %1908 = vst [vmem:[#allocation2 + $0x8] sm:$0xff] %v456_v15  ;;  %1916 = vst [vmem:[#allocation4 + $0x8] sm:$0xff] %v1282_v6  ;;  %vm983_vm15 = vcmp.gt.s32.totalorder %v982_v7, 0  ;;  %v517_v38 = vadd.s32 %v516_v42, %v512_v63  ;;  %vm2676_vm0 = vcmp.le.f32.partialorder %v766_v8, 0.7853982  ;;  %v2686_v5 = vadd.f32 %v239_v37, %v2230_v61 }
 0x12c   :  { %v845_v33 = vor.u32 4788187, %v844_v13  ;;  %v984_v16 = vsel %vm983_vm15, %v982_v7, 0  ;;  %v972_v39 = vand.u32 2147483647, %v2605_v23  ;;  %v848_v21 = vcvt.s32.f32 %v841_v27 }
 0x12d   :  { %v986_v28 = vand.u32 31, %v984_v16  ;;  %v855_v48 = vsel %vm2676_vm0, 0, %v853_v20  ;;  %v518_v45 = vadd.s32 536870912, %v517_v38  ;;  %v985_v46 = vshrl.u32 %v984_v16, 5 }
 0x12e   :  { %v846_v52 = vand.u32 2147483647, %v845_v33  ;;  %v1688_v8 = vadd.s32 3, %v855_v48  ;;  %v979_v60 = vand.u32 8388607, %v972_v39  ;;  %v2709_v31 = vand.u32 3, %v855_v48 }
 0x12f   :  { %v987_v17 = vsub.s32 32, %v986_v28  ;;  %v2683_v34 = vshrl.u32 %v518_v45, 30  ;;  %v989_v11 = vshll.u32 %v2158_v53, %v986_v28  ;;  %v992_v61 = vshll.u32 %v2159_v55, %v986_v28 }
 0x130   :  { %v849_v10 = vmul.f32 %v848_v21, %v846_v52  ;;  %v995_v56 = vshll.u32 %v2160_v58, %v986_v28  ;;  %v998_v12 = vshll.u32 %v2161_v62, %v986_v28  ;;  %v1001_v30 = vshll.u32 %v2162_v0, %v986_v28 }
 0x131   :  { %v990_v32 = vshrl.u32 %v2159_v55, %v987_v17  ;;  %v993_v41 = vshrl.u32 %v2160_v58, %v987_v17  ;;  %v520_v2 = vshll.u32 %v2683_v34, 30  ;;  %v996_v29 = vshrl.u32 %v2161_v62, %v987_v17 }
 0x132   :  { %v850_v25 = vxor.u32 2147483648, %v849_v10  ;;  %v999_v43 = vshrl.u32 %v2162_v0, %v987_v17  ;;  %v1002_v35 = vshrl.u32 %v2163_v9, %v987_v17  ;;  %v980_v47 = vor.u32 8388608, %v979_v60 }
 0x133   :  { %v2700_v44 = vsub.s32 %v517_v38, %v520_v2  ;;  %v991_v59 = vor.u32 %v990_v32, %v989_v11  ;;  %v994_v49 = vor.u32 %v993_v41, %v992_v61  ;;  %v997_v7 = vor.u32 %v996_v29, %v995_v56 }
 0x134   :  { %v851_v57 = vsel %vm768_vm11, %v850_v25, %v849_v10  ;;  %v1000_v54 = vor.u32 %v999_v43, %v998_v12  ;;  %v2711_v51 = vand.u32 3, %v1688_v8  ;;  %v1003_v1 = vor.u32 %v1002_v35, %v1001_v30 }
 0x135   :  { %v854_v22 = vsel %vm2676_vm0, %v2333_v50, %v851_v57  ;;  %v523_v26 = vsub.s32 0, %v2700_v44  ;;  %v988_v63 = vshrl.u32 %v2158_v53, %v987_v17  ;;  %vm1004_vm13 = vcmp.lt.s32.totalorder %v985_v46, 1 }
 0x136   :  { %2089 = vcosq.f32 %v854_v22  ;;  %vm1007_vm1 = vcmp.lt.s32.totalorder %v985_v46, 4  ;;  %v666_v3 = vand.u32 2139095040, %v2686_v5  ;;  %v1012_v27 = vsel %vm1004_vm13, %v991_v59, %v994_v49 }
 0x137   :  { %2091 = vsinq.f32 %v854_v22  ;;  %v1968_v24 = vmin.u32 %v523_v26, %v2700_v44  ;;  %v1009_v6 = vsel %vm1007_vm1, %v997_v7, 2102212464  ;;  %v1013_v13 = vsel %vm1007_vm1, %v1000_v54, 920167782 }
 0x138   :  { %vm1005_vm2 = vcmp.lt.s32.totalorder %v985_v46, 2  ;;  %vm1006_vm3 = vcmp.lt.s32.totalorder %v985_v46, 3  ;;  %v1016_v20 = vsel %vm1004_vm13, %v994_v49, %v997_v7  ;;  %v1020_v42 = vshll.u32 %v980_v47, 8 }
 0x139   :  { %v525_v15 = vclz %v1968_v24  ;;  %v1008_v38 = vsel %vm1004_vm13, %v988_v63, %v991_v59  ;;  %v1014_v16 = vsel %vm1006_vm3, %v997_v7, %v1013_v13  ;;  %v1017_v37 = vsel %vm1007_vm1, %v1003_v1, 1326507024 }
 0x13a   :  { %vm864_vm4 = vcmp.eq.s32.totalorder %v2709_v31, 2  ;;  %vm459_vm5 = vcmp.lt.s32.totalorder %v2449_v18, 0  ;;  %v1010_v40 = vsel %vm1006_vm3, %v994_v49, %v1009_v6  ;;  %v1015_v28 = vsel %vm1005_vm2, %v1012_v27, %v1014_v16 }
 0x13b   :  { %v1969_v33 = vadd.s32 4294967294, %v525_v15  ;;  %v1018_v52 = vsel %vm1006_vm3, %v1000_v54, %v1017_v37  ;;  %v667_v21 = vshrl.u32 %v666_v3, 23  ;;  %vm861_vm6 = vcmp.eq.s32.totalorder %v2709_v31, 0 }
 0x13c   :  { %v1019_v48 = vsel %vm1005_vm2, %v1016_v20, %v1018_v52  ;;  %v2721_v45 = vmul.u32.u64.low %v1020_v42, %v1015_v28  ;;  %v2722_v17 = vmul.u32.u64.high %v1020_v42, %v1015_v28, %v2721_v45  ;;  %vm860_vm8 = vcmp.lt.s32.totalorder %v2709_v31, 2  ;;  %v2109_v52 = vld [vmem:[%s2949_s1 + $0x3] ss:$0 sm:$0xff]  ;;  %s2164_s1 = smov [#allocation2]  }
 0x13d   :  { %vm1970_vm7 = vcmp.lt.s32.totalorder %v1969_v33, 0  ;;  %vm1690_vm9 = vcmp.lt.s32.totalorder %v2711_v51, 2  ;;  %v2727_v8 = vmul.u32.u64.low %v1020_v42, %v1019_v48  ;;  %v2728_v60 = vmul.u32.u64.high %v1020_v42, %v1019_v48, %v2727_v8  ;;  %s1928_s10 = sshll.u32 %s2164_s1, 4  ;;  %s1929_s10 = int_to_ptr.vmem [resolvable:$true] %s1928_s10 }
 0x13e   :  { %v528_v10 = vsel %vm1970_vm7, 0, %v1969_v33  ;;  %v1975_v32 = vadd.s32 4294967169, %v667_v21  ;;  %vm858_vm10 = vweird.f32 %v2333_v50  ;;  %vm2733_vm11 = vcmp.le.f32.partialorder %v457_v19, 0.7853982  ;;  %s2110_s13 = scalar_lea.vmem %s1929_s10, 1024  ;;  %p2115_p1 = scmp.lt.s32.totalorder %s1929_s10, %s1929_s10 }
 0x13f   :  { %v513_v25 = vadd.s32 %v2640_v36, %v2646_v14  ;;  %v529_v2 = vsub.s32 32, %v528_v10  ;;  %v533_v29 = vsub.s32 4294967266, %v528_v10  ;;  %v1011_v43 = vsel %vm1005_vm2, %v1008_v38, %v1010_v40  ;;  %v223_v38 = vpop.permute.xlu1 %222  ;;  %p2111_p0 = scmp.ne.s32.totalorder %s1929_s10, %s2110_s13  ;;  %p2116_p2 = scmp.lt.s32.totalorder %s2110_s13, %s2110_s13 }
 0x140   :  { %vm1691_vm12 = vcmp.eq.s32.totalorder %v2711_v51, 0  ;;  %v543_v11 = vsub.s32 4, %v2683_v34  ;;  %v663_v61 = vand.u32 2147483647, %v2686_v5  ;;  %v673_v56 = vadd.s32 1, %v1975_v32 }
 0x141   :  { %v530_v57 = vshll.u32 %v2700_v44, %v528_v10  ;;  %v531_v19 = vshrl.u32 %v513_v25, %v529_v2  ;;  %v534_v12 = vadd.s32 127, %v533_v29  ;;  %v1030_v35 = vadd.s32 1, %v2722_v17  ;;  %p2117_p3 = por %p2116_p2, %p2115_p1 }
 0x142   :  { %vm1694_vm14 = vcmp.eq.s32.totalorder %v2711_v51, 2  ;;  %v1027_v36 = vmul.u32 %v1020_v42, %v1011_v43  ;;  %vm1029_vm15 = vc.u32 %v2728_v60, %v2721_v45  ;;  %vm674_vm0 = vcmp.gt.s32.totalorder %v673_v56, 0 }
 0x143   :  { %v2090_v22 = vpop.eup %2089  ;;  %v532_v59 = vor.u32 %v531_v19, %v530_v57  ;;  %v535_v49 = vshll.u32 %v534_v12, 23  ;;  %v1031_v30 = vsel %vm1029_vm15, %v1030_v35, %v2722_v17  ;;  %v670_v7 = vand.u32 8388607, %v663_v61  ;;  %p2118_p4 = pnand %p2117_p3, %p2111_p0 }
 0x144   :  { %v2092_v14 = vpop.eup %2091  ;;  %v865_v46 = vxor.u32 2147483648, %v2090_v22  ;;  %v1032_v44 = vadd.s32 %v1031_v30, %v1027_v36  ;;  %v675_v54 = vsel %vm674_vm0, %v673_v56, 0  ;;  %v544_v63 = vsel %vm459_vm5, %v543_v11, %v2683_v34 }
 0x145   :  { %v862_v26 = vxor.u32 2147483648, %v2092_v14  ;;  %v536_v1 = vor.u32 4788187, %v535_v49  ;;  %v539_v6 = vcvt.s32.f32 %v532_v59  ;;  %v677_v33 = vand.u32 31, %v675_v54 }
 0x146   :  { %v866_v47 = vsel %vm864_vm4, %v865_v46, %v2092_v14  ;;  %v1696_v24 = vsel %vm1694_vm14, %v865_v46, %v2092_v14  ;;  %v1033_v27 = vadd.s32 536870912, %v1032_v44  ;;  %v546_v37 = vsel %vm2733_vm11, 0, %v544_v63 }
 0x147   :  { %v863_v3 = vsel %vm861_vm6, %v2090_v22, %v862_v26  ;;  %v1693_v15 = vsel %vm1691_vm12, %v2090_v22, %v862_v26  ;;  %v537_v42 = vand.u32 2147483647, %v536_v1  ;;  %v678_v28 = vsub.s32 32, %v677_v33 }
 0x148   :  { %v867_v13 = vsel %vm860_vm8, %v863_v3, %v866_v47  ;;  %v1697_v20 = vsel %vm1690_vm9, %v1693_v15, %v1696_v24  ;;  %v2770_v40 = vshrl.u32 %v1033_v27, 30  ;;  %v241_v21 = vmul.f32 %v2109_v52, %v223_v38 }
 0x149   :  { %v868_v34 = vsel %vm858_vm10, nan, %v867_v13  ;;  %v1698_v16 = vsel %vm858_vm10, nan, %v1697_v20  ;;  %v540_v31 = vmul.f32 %v539_v6, %v537_v42  ;;  %v1376_v17 = vadd.s32 3, %v546_v37 }
 0x14a   :  { %1912 = vst [vmem:[#allocation2 + $0x28] sm:$0xff] %v868_v34  ;;  %1920 = vst [vmem:[#allocation4 + $0x28] sm:$0xff] %v1698_v16  ;;  %v1035_v51 = vshll.u32 %v2770_v40, 30  ;;  %v681_v50 = vshrl.u32 %v2159_v55, %v678_v28  ;;  %v684_v10 = vshrl.u32 %v2160_v58, %v678_v28  ;;  %v671_v32 = vor.u32 8388608, %v670_v7 }
 0x14b   :  { %v541_v48 = vxor.u32 2147483648, %v540_v31  ;;  %v687_v25 = vshrl.u32 %v2161_v62, %v678_v28  ;;  %v690_v2 = vshrl.u32 %v2162_v0, %v678_v28  ;;  %v676_v43 = vshrl.u32 %v675_v54, 5 }
 0x14c   :  { %v2778_v8 = vsub.s32 %v1032_v44, %v1035_v51  ;;  %v680_v11 = vshll.u32 %v2158_v53, %v677_v33  ;;  %v683_v56 = vshll.u32 %v2159_v55, %v677_v33  ;;  %v686_v12 = vshll.u32 %v2160_v58, %v677_v33 }
 0x14d   :  { %v542_v29 = vsel %vm459_vm5, %v541_v48, %v540_v31  ;;  %v689_v35 = vshll.u32 %v2161_v62, %v677_v33  ;;  %v2792_v22 = vand.u32 3, %v546_v37  ;;  %v2795_v30 = vand.u32 3, %v1376_v17 }
 0x14e   :  { %v545_v57 = vsel %vm2733_vm11, %v2449_v18, %v542_v29  ;;  %v1038_v19 = vsub.s32 0, %v2778_v8  ;;  %v682_v36 = vor.u32 %v681_v50, %v680_v11  ;;  %v685_v14 = vor.u32 %v684_v10, %v683_v56 }
 0x14f   :  { %2093 = vcosq.f32 %v545_v57  ;;  %v688_v59 = vor.u32 %v687_v25, %v686_v12  ;;  %v691_v49 = vor.u32 %v690_v2, %v689_v35  ;;  %v692_v41 = vshll.u32 %v2162_v0, %v677_v33 }
 0x150   :  { %2095 = vsinq.f32 %v545_v57  ;;  %v1988_v46 = vmin.u32 %v1038_v19, %v2778_v8  ;;  %v693_v26 = vshrl.u32 %v2163_v9, %v678_v28  ;;  %v711_v44 = vshll.u32 %v671_v32, 8 }
 0x151   :  { %v679_v54 = vshrl.u32 %v2158_v53, %v678_v28  ;;  %vm695_vm13 = vcmp.lt.s32.totalorder %v676_v43, 1  ;;  %v2801_v47 = vadd.f32 %v241_v21, %v2233_v4  ;;  %vm696_vm1 = vcmp.lt.s32.totalorder %v676_v43, 2 }
 0x152   :  { %v1040_v7 = vclz %v1988_v46  ;;  %v694_v24 = vor.u32 %v693_v26, %v692_v41  ;;  %vm697_vm2 = vcmp.lt.s32.totalorder %v676_v43, 3  ;;  %vm698_vm3 = vcmp.lt.s32.totalorder %v676_v43, 4 }
 0x153   :  { %v700_v63 = vsel %vm698_vm3, %v688_v59, 2102212464  ;;  %v703_v3 = vsel %vm695_vm13, %v682_v36, %v685_v14  ;;  %v704_v15 = vsel %vm698_vm3, %v691_v49, 920167782  ;;  %vm974_vm4 = vcmp.lt.s32.totalorder %v2605_v23, 0 }
 0x154   :  { %v1989_v1 = vadd.s32 4294967294, %v1040_v7  ;;  %v699_v6 = vsel %vm695_vm13, %v679_v54, %v682_v36  ;;  %v705_v27 = vsel %vm697_vm2, %v688_v59, %v704_v15  ;;  %v707_v13 = vsel %vm695_vm13, %v685_v14, %v688_v59 }
 0x155   :  { %v708_v20 = vsel %vm698_vm3, %v694_v24, 1326507024  ;;  %v701_v42 = vsel %vm697_vm2, %v685_v14, %v700_v63  ;;  %v706_v33 = vsel %vm696_vm1, %v703_v3, %v705_v27  ;;  %vm552_vm6 = vcmp.eq.s32.totalorder %v2792_v22, 0 }
 0x156   :  { %vm1990_vm5 = vcmp.lt.s32.totalorder %v1989_v1, 0  ;;  %v709_v4 = vsel %vm697_vm2, %v691_v49, %v708_v20  ;;  %v2807_v16 = vmul.u32.u64.low %v711_v44, %v706_v33  ;;  %v2808_v37 = vmul.u32.u64.high %v711_v44, %v706_v33, %v2807_v16 }
 0x157   :  { %v1043_v38 = vsel %vm1990_vm5, 0, %v1989_v1  ;;  %v710_v34 = vsel %vm696_vm1, %v707_v13, %v709_v4  ;;  %vm551_vm7 = vcmp.lt.s32.totalorder %v2792_v22, 2  ;;  %vm555_vm8 = vcmp.eq.s32.totalorder %v2792_v22, 2 }
 0x158   :  { %v1028_v31 = vadd.s32 %v2721_v45, %v2728_v60  ;;  %v1044_v28 = vsub.s32 32, %v1043_v38  ;;  %v1048_v51 = vsub.s32 4294967266, %v1043_v38  ;;  %vm549_vm9 = vweird.f32 %v2449_v18 }
 0x159   :  { %v1058_v52 = vsub.s32 4, %v2770_v40  ;;  %v2817_v21 = vmul.u32.u64.low %v711_v44, %v710_v34  ;;  %v2818_v48 = vmul.u32.u64.high %v711_v44, %v710_v34, %v2817_v21  ;;  %v872_v17 = vand.u32 2139095040, %v2801_v47 }
 0x15a   :  { %v1045_v50 = vshll.u32 %v2778_v8, %v1043_v38  ;;  %v1046_v10 = vshrl.u32 %v1028_v31, %v1044_v28  ;;  %v1049_v32 = vadd.s32 127, %v1048_v51  ;;  %v702_v25 = vsel %vm696_vm1, %v699_v6, %v701_v42 }
 0x15b   :  { %vm1378_vm10 = vcmp.lt.s32.totalorder %v2795_v30, 2  ;;  %vm1379_vm11 = vcmp.eq.s32.totalorder %v2795_v30, 0  ;;  %v721_v45 = vadd.s32 1, %v2808_v37  ;;  %v873_v60 = vshrl.u32 %v872_v17, 23 }
 0x15c   :  { %v2094_v2 = vpop.eup %2093  ;;  %vm1382_vm12 = vcmp.eq.s32.totalorder %v2795_v30, 2  ;;  %v1047_v29 = vor.u32 %v1046_v10, %v1045_v50  ;;  %v1050_v11 = vshll.u32 %v1049_v32, 23  ;;  %v869_v56 = vand.u32 2147483647, %v2801_v47 }
 0x15d   :  { %v2096_v57 = vpop.eup %2095  ;;  %v556_v8 = vxor.u32 2147483648, %v2094_v2  ;;  %v718_v19 = vmul.u32 %v711_v44, %v702_v25  ;;  %vm720_vm14 = vc.u32 %v2818_v48, %v2807_v16  ;;  %v1983_v43 = vadd.s32 4294967169, %v873_v60 }
 0x15e   :  { %v553_v12 = vxor.u32 2147483648, %v2096_v57  ;;  %v1051_v35 = vor.u32 4788187, %v1050_v11  ;;  %v1059_v36 = vsel %vm974_vm4, %v1058_v52, %v2770_v40  ;;  %v722_v14 = vsel %vm720_vm14, %v721_v45, %v2808_v37 }
 0x15f   :  { %v557_v46 = vsel %vm555_vm8, %v556_v8, %v2096_v57  ;;  %v1384_v59 = vsel %vm1382_vm12, %v556_v8, %v2096_v57  ;;  %v723_v49 = vadd.s32 %v722_v14, %v718_v19  ;;  %v879_v41 = vadd.s32 1, %v1983_v43 }
 0x160   :  { %v554_v26 = vsel %vm552_vm6, %v2094_v2, %v553_v12  ;;  %v1381_v44 = vsel %vm1379_vm11, %v2094_v2, %v553_v12  ;;  %v1052_v7 = vand.u32 2147483647, %v1051_v35  ;;  %v1054_v54 = vcvt.s32.f32 %v1047_v29 }
 0x161   :  { %v558_v24 = vsel %vm551_vm7, %v554_v26, %v557_v46  ;;  %v1385_v40 = vsel %vm1378_vm10, %v1381_v44, %v1384_v59  ;;  %v724_v1 = vadd.s32 536870912, %v723_v49  ;;  %vm880_vm15 = vcmp.gt.s32.totalorder %v879_v41, 0 }
 0x162   :  { %v559_v63 = vsel %vm549_vm9, nan, %v558_v24  ;;  %v1386_v3 = vsel %vm549_vm9, nan, %v1385_v40  ;;  %v1055_v15 = vmul.f32 %v1054_v54, %v1052_v7  ;;  %v881_v6 = vsel %vm880_vm15, %v879_v41, 0 }
 0x163   :  { %1909 = vst [vmem:[#allocation2 + $0x10] sm:$0xff] %v559_v63  ;;  %1917 = vst [vmem:[#allocation4 + $0x10] sm:$0xff] %v1386_v3  ;;  %vm973_vm0 = vcmp.le.f32.partialorder %v972_v39, 0.7853982  ;;  %v2850_v22 = vshrl.u32 %v724_v1, 30  ;;  %v883_v27 = vand.u32 31, %v881_v6  ;;  %v719_v19 = vadd.s32 %v2807_v16, %v2818_v48 }
 0x164   :  { %v876_v30 = vand.u32 8388607, %v869_v56  ;;  %v1056_v13 = vxor.u32 2147483648, %v1055_v15  ;;  %v1061_v20 = vsel %vm973_vm0, 0, %v1059_v36  ;;  %v2860_v37 = vshrl.u32 %v881_v6, 5 }
 0x165   :  { %v726_v42 = vshll.u32 %v2850_v22, 30  ;;  %v884_v33 = vsub.s32 32, %v883_v27  ;;  %v1896_v38 = vadd.s32 3, %v1061_v20  ;;  %v886_v52 = vshll.u32 %v2158_v53, %v883_v27 }
 0x166   :  { %v1057_v18 = vsel %vm974_vm4, %v1056_v13, %v1055_v15  ;;  %v877_v39 = vor.u32 8388608, %v876_v30  ;;  %v889_v21 = vshll.u32 %v2159_v55, %v883_v27  ;;  %v892_v17 = vshll.u32 %v2160_v58, %v883_v27 }
 0x167   :  { %v1060_v4 = vsel %vm973_vm0, %v2605_v23, %v1057_v18  ;;  %v2858_v34 = vsub.s32 %v723_v49, %v726_v42  ;;  %v887_v31 = vshrl.u32 %v2159_v55, %v884_v33  ;;  %v890_v28 = vshrl.u32 %v2160_v58, %v884_v33 }
 0x168   :  { %2097 = vcosq.f32 %v1060_v4  ;;  %v893_v50 = vshrl.u32 %v2161_v62, %v884_v33  ;;  %v895_v10 = vshll.u32 %v2161_v62, %v883_v27  ;;  %v896_v32 = vshrl.u32 %v2162_v0, %v884_v33 }
 0x169   :  { %2099 = vsinq.f32 %v1060_v4  ;;  %v729_v51 = vsub.s32 0, %v2858_v34  ;;  %v2871_v25 = vand.u32 3, %v1061_v20  ;;  %v888_v60 = vor.u32 %v887_v31, %v886_v52 }
 0x16a   :  { %v891_v2 = vor.u32 %v890_v28, %v889_v21  ;;  %v894_v29 = vor.u32 %v893_v50, %v892_v17  ;;  %v897_v11 = vor.u32 %v896_v32, %v895_v10  ;;  %v1897_v57 = vand.u32 3, %v1896_v38 }
 0x16b   :  { %v1976_v45 = vmin.u32 %v729_v51, %v2858_v34  ;;  %v898_v55 = vshll.u32 %v2162_v0, %v883_v27  ;;  %v899_v58 = vshrl.u32 %v2163_v9, %v884_v33  ;;  %v885_v62 = vshrl.u32 %v2158_v53, %v884_v33 }
 0x16c   :  { %vm901_vm13 = vcmp.lt.s32.totalorder %v2860_v37, 1  ;;  %v917_v43 = vshll.u32 %v877_v39, 8  ;;  %vm903_vm1 = vcmp.lt.s32.totalorder %v2860_v37, 3  ;;  %vm904_vm2 = vcmp.lt.s32.totalorder %v2860_v37, 4 }
 0x16d   :  { %v731_v8 = vclz %v1976_v45  ;;  %v900_v35 = vor.u32 %v899_v58, %v898_v55  ;;  %v906_v36 = vsel %vm904_vm2, %v894_v29, 2102212464  ;;  %v909_v0 = vsel %vm901_vm13, %v888_v60, %v891_v2 }
 0x16e   :  { %v910_v14 = vsel %vm904_vm2, %v897_v11, 920167782  ;;  %v913_v9 = vsel %vm901_vm13, %v891_v2, %v894_v29  ;;  %vm902_vm4 = vcmp.lt.s32.totalorder %v2860_v37, 2  ;;  %vm1064_vm5 = vweird.f32 %v2605_v23 }
 0x16f   :  { %v1977_v12 = vadd.s32 4294967294, %v731_v8  ;;  %v911_v53 = vsel %vm903_vm1, %v894_v29, %v910_v14  ;;  %v914_v16 = vsel %vm904_vm2, %v900_v35, 1326507024  ;;  %v905_v46 = vsel %vm901_vm13, %v885_v62, %v888_v60 }
 0x170   :  { %v912_v59 = vsel %vm902_vm4, %v909_v0, %v911_v53  ;;  %v915_v49 = vsel %vm903_vm1, %v897_v11, %v914_v16  ;;  %v907_v44 = vsel %vm903_vm1, %v891_v2, %v906_v36  ;;  %vm1066_vm6 = vcmp.lt.s32.totalorder %v2871_v25, 2 }
 0x171   :  { %vm1978_vm3 = vcmp.lt.s32.totalorder %v1977_v12, 0  ;;  %v916_v7 = vsel %vm902_vm4, %v913_v9, %v915_v49  ;;  %v2903_v40 = vmul.u32.u64.low %v917_v43, %v912_v59  ;;  %v2904_v1 = vmul.u32.u64.high %v917_v43, %v912_v59, %v2903_v40 }
 0x172   :  { %v734_v48 = vsel %vm1978_vm3, 0, %v1977_v12  ;;  %v2900_v54 = vmul.u32.u64.low %v917_v43, %v916_v7  ;;  %v2901_v24 = vmul.u32.u64.high %v917_v43, %v916_v7, %v2900_v54  ;;  %vm1067_vm7 = vcmp.eq.s32.totalorder %v2871_v25, 0 }
 0x173   :  { %v735_v41 = vsub.s32 32, %v734_v48  ;;  %v739_v26 = vsub.s32 4294967266, %v734_v48  ;;  %v736_v3 = vshll.u32 %v2858_v34, %v734_v48  ;;  %vm1070_vm8 = vcmp.eq.s32.totalorder %v2871_v25, 2 }
 0x174   :  { %vm1902_vm9 = vcmp.eq.s32.totalorder %v1897_v57, 2  ;;  %v908_v33 = vsel %vm902_vm4, %v905_v46, %v907_v44  ;;  %vm1898_vm10 = vcmp.lt.s32.totalorder %v1897_v57, 2  ;;  %vm1899_vm11 = vcmp.eq.s32.totalorder %v1897_v57, 0 }
 0x175   :  { %v2098_v63 = vpop.eup %2097  ;;  %v737_v15 = vshrl.u32 %v719_v19, %v735_v41  ;;  %v740_v6 = vadd.s32 127, %v739_v26  ;;  %vm926_vm12 = vc.u32 %v2901_v24, %v2903_v40  ;;  %v924_v51 = vmul.u32 %v917_v43, %v908_v33 }
 0x176   :  { %v2100_v30 = vpop.eup %2099  ;;  %v1071_v27 = vxor.u32 2147483648, %v2098_v63  ;;  %v927_v52 = vadd.s32 1, %v2904_v1  ;;  %vm665_vm14 = vcmp.lt.s32.totalorder %v2686_v5, 0  ;;  %v749_v2 = vsub.s32 4, %v2850_v22 }
 0x177   :  { %v1068_v13 = vxor.u32 2147483648, %v2100_v30  ;;  %v738_v20 = vor.u32 %v737_v15, %v736_v3  ;;  %v741_v42 = vshll.u32 %v740_v6, 23  ;;  %vm664_vm15 = vcmp.le.f32.partialorder %v663_v61, 0.7853982 }
 0x178   :  { %v1072_v18 = vsel %vm1070_vm8, %v1071_v27, %v2100_v30  ;;  %v1904_v4 = vsel %vm1902_vm9, %v1071_v27, %v2100_v30  ;;  %v928_v10 = vsel %vm926_vm12, %v927_v52, %v2904_v1  ;;  %v750_v8 = vsel %vm665_vm14, %v749_v2, %v2850_v22 }
 0x179   :  { %v1069_v38 = vsel %vm1067_vm7, %v2098_v63, %v1068_v13  ;;  %v1901_v34 = vsel %vm1899_vm11, %v2098_v63, %v1068_v13  ;;  %v742_v39 = vor.u32 4788187, %v741_v42  ;;  %v745_v50 = vcvt.s32.f32 %v738_v20 }
 0x17a   :  { %v1073_v31 = vsel %vm1066_vm6, %v1069_v38, %v1072_v18  ;;  %v1905_v28 = vsel %vm1898_vm10, %v1901_v34, %v1904_v4  ;;  %v929_v45 = vadd.s32 %v928_v10, %v924_v51  ;;  %v752_v58 = vsel %vm664_vm15, 0, %v750_v8 }
 0x17b   :  { %v1074_v37 = vsel %vm1064_vm5, nan, %v1073_v31  ;;  %v1906_v21 = vsel %vm1064_vm5, nan, %v1905_v28  ;;  %v743_v17 = vand.u32 2147483647, %v742_v39  ;;  %v1584_v43 = vadd.s32 3, %v752_v58 }
 0x17c   :  { %1914 = vst [vmem:[#allocation2 + $0x38] sm:$0xff] %v1074_v37  ;;  %1922 = vst [vmem:[#allocation4 + $0x38] sm:$0xff] %v1906_v21  ;;  %v930_v60 = vadd.s32 536870912, %v929_v45  ;;  %v756_v35 = vand.u32 3, %v752_v58  ;;  %vm755_vm13 = vweird.f32 %v2686_v5  ;;  %v925_v22 = vadd.s32 %v2903_v40, %v2901_v24 }
 0x17d   :  { %v746_v32 = vmul.f32 %v745_v50, %v743_v17  ;;  %v1585_v0 = vand.u32 3, %v1584_v43  ;;  %vm871_vm7 = vcmp.lt.s32.totalorder %v2801_v47, 0  ;;  %vm870_vm8 = vcmp.le.f32.partialorder %v869_v56, 0.7853982 }
 0x17e   :  { %v931_v23 = vshrl.u32 %v930_v60, 30  ;;  %vm758_vm1 = vcmp.eq.s32.totalorder %v756_v35, 0  ;;  %vm761_vm2 = vcmp.eq.s32.totalorder %v756_v35, 2  ;;  %vm757_vm5 = vcmp.lt.s32.totalorder %v756_v35, 2 }
 0x17f   :  { %v747_v25 = vxor.u32 2147483648, %v746_v32  ;;  %vm1587_vm3 = vcmp.eq.s32.totalorder %v1585_v0, 0  ;;  %vm1590_vm4 = vcmp.eq.s32.totalorder %v1585_v0, 2  ;;  %vm1586_vm6 = vcmp.lt.s32.totalorder %v1585_v0, 2 }
 0x180   :  { %v932_v57 = vshll.u32 %v931_v23, 30  ;;  %v955_v42 = vsub.s32 4, %v931_v23 }
 0x181   :  { %v748_v29 = vsel %vm665_vm14, %v747_v25, %v746_v32 }
 0x182   :  { %v751_v11 = vsel %vm664_vm15, %v2686_v5, %v748_v29  ;;  %v933_v55 = vsub.s32 %v929_v45, %v932_v57  ;;  %v956_v4 = vsel %vm871_vm7, %v955_v42, %v931_v23 }
 0x183   :  { %2101 = vcosq.f32 %v751_v11  ;;  %v958_v5 = vsel %vm870_vm8, 0, %v956_v4 }
 0x184   :  { %2103 = vsinq.f32 %v751_v11  ;;  %v935_v19 = vsub.s32 0, %v933_v55  ;;  %v1792_v38 = vadd.s32 3, %v958_v5  ;;  %v962_v34 = vand.u32 3, %v958_v5 }
 0x186   :  { %v1984_v62 = vmin.u32 %v935_v19, %v933_v55  ;;  %v1793_v39 = vand.u32 3, %v1792_v38  ;;  %vm967_vm9 = vcmp.eq.s32.totalorder %v962_v34, 2  ;;  %vm964_vm11 = vcmp.eq.s32.totalorder %v962_v34, 0 }
 0x187   :  { %vm963_vm14 = vcmp.lt.s32.totalorder %v962_v34, 2 }
 0x188   :  { %v937_v12 = vclz %v1984_v62  ;;  %vm1798_vm10 = vcmp.eq.s32.totalorder %v1793_v39, 2  ;;  %vm1795_vm12 = vcmp.eq.s32.totalorder %v1793_v39, 0  ;;  %vm1794_vm15 = vcmp.lt.s32.totalorder %v1793_v39, 2 }
 0x18a   :  { %v1985_v36 = vadd.s32 4294967294, %v937_v12 }
 0x18c   :  { %vm1986_vm0 = vcmp.lt.s32.totalorder %v1985_v36, 0 }
 0x18d   :  { %v940_v14 = vsel %vm1986_vm0, 0, %v1985_v36  ;;  %vm961_vm0 = vweird.f32 %v2801_v47 }
 0x18e   :  { %v941_v16 = vsub.s32 32, %v940_v14  ;;  %v945_v48 = vsub.s32 4294967266, %v940_v14  ;;  %v942_v59 = vshll.u32 %v933_v55, %v940_v14 }
 0x190   :  { %v2102_v61 = vpop.eup %2101  ;;  %v943_v26 = vshrl.u32 %v925_v22, %v941_v16  ;;  %v946_v44 = vadd.s32 127, %v945_v48 }
 0x191   :  { %v2104_v9 = vpop.eup %2103  ;;  %v762_v53 = vxor.u32 2147483648, %v2102_v61 }
 0x192   :  { %v759_v46 = vxor.u32 2147483648, %v2104_v9  ;;  %v944_v3 = vor.u32 %v943_v26, %v942_v59  ;;  %v947_v15 = vshll.u32 %v946_v44, 23 }
 0x193   :  { %v763_v49 = vsel %vm761_vm2, %v762_v53, %v2104_v9  ;;  %v1592_v41 = vsel %vm1590_vm4, %v762_v53, %v2104_v9 }
 0x194   :  { %v760_v7 = vsel %vm758_vm1, %v2102_v61, %v759_v46  ;;  %v1589_v54 = vsel %vm1587_vm3, %v2102_v61, %v759_v46  ;;  %v948_v6 = vor.u32 4788187, %v947_v15  ;;  %v951_v27 = vcvt.s32.f32 %v944_v3 }
 0x195   :  { %v764_v1 = vsel %vm757_vm5, %v760_v7, %v763_v49  ;;  %v1593_v63 = vsel %vm1586_vm6, %v1589_v54, %v1592_v41 }
 0x196   :  { %v765_v24 = vsel %vm755_vm13, nan, %v764_v1  ;;  %v1594_v40 = vsel %vm755_vm13, nan, %v1593_v63  ;;  %v949_v30 = vand.u32 2147483647, %v948_v6 }
 0x197   :  { %1911 = vst [vmem:[#allocation2 + $0x20] sm:$0xff] %v765_v24  ;;  %1919 = vst [vmem:[#allocation4 + $0x20] sm:$0xff] %v1594_v40 }
 0x198   :  { %v952_v13 = vmul.f32 %v951_v27, %v949_v30 }
 0x19a   :  { %v953_v20 = vxor.u32 2147483648, %v952_v13 }
 0x19c   :  { %v954_v33 = vsel %vm871_vm7, %v953_v20, %v952_v13 }
 0x19d   :  { %v957_v18 = vsel %vm870_vm8, %v2801_v47, %v954_v33 }
 0x19e   :  { %2105 = vcosq.f32 %v957_v18 }
 0x19f   :  { %2107 = vsinq.f32 %v957_v18 }
 0x1ab   :  { %v2106_v31 = vpop.eup %2105 }
 0x1ac   :  { %v2108_v28 = vpop.eup %2107  ;;  %v968_v51 = vxor.u32 2147483648, %v2106_v31 }
 0x1ad   :  { %v965_v52 = vxor.u32 2147483648, %v2108_v28 }
 0x1ae   :  { %v969_v56 = vsel %vm967_vm9, %v968_v51, %v2108_v28  ;;  %v1800_v37 = vsel %vm1798_vm10, %v968_v51, %v2108_v28 }
 0x1af   :  { %v966_v21 = vsel %vm964_vm11, %v2106_v31, %v965_v52  ;;  %v1797_v17 = vsel %vm1795_vm12, %v2106_v31, %v965_v52 }
 0x1b0   :  { %v970_v50 = vsel %vm963_vm14, %v966_v21, %v969_v56  ;;  %v1801_v10 = vsel %vm1794_vm15, %v1797_v17, %v1800_v37 }
 0x1b1   :  { %v971_v32 = vsel %vm961_vm0, nan, %v970_v50  ;;  %v1802_v45 = vsel %vm961_vm0, nan, %v1801_v10 }
 0x1b2   :  { %1913 = vst [vmem:[#allocation2 + $0x30] sm:$0xff] %v971_v32  ;;  %1921 = vst [vmem:[#allocation4 + $0x30] sm:$0xff] %v1802_v45 }
 0x1b3   :  { %2121 = shalt.err (!%p2118_p4)
}
 0x1b4   :  { %s2166_s14 = smov 128   ;;  %s2167_s15 = smov 8  }
 0x1b5   :  { %1934 = dma.vmem_to_hbm [thread:$0]  %s1929_s10, 1024, %s2950_s2, [#allocation3], %s2166_s14, %s2166_s14, %s2167_s15  }
 0x1b6   :  { %s2130_s18 = scalar_lea.vmem %s1941_s12, 1024  ;;  %p2135_p6 = scmp.lt.s32.totalorder %s1941_s12, %s1941_s12 }
 0x1b7   :  { %p2131_p5 = scmp.ne.s32.totalorder %s1941_s12, %s2130_s18  ;;  %p2136_p7 = scmp.lt.s32.totalorder %s2130_s18, %s2130_s18 }
 0x1b9   :  { %p2137_p8 = por %p2136_p7, %p2135_p6 }
 0x1bb   :  { %p2138_p9 = pnand %p2137_p8, %p2131_p5 }
 0x1bd   :  { %2141 = shalt.err (!%p2138_p9)
}
 0x1be   :  { %1946 = dma.vmem_to_hbm [thread:$0]  %s1941_s12, 1024, %s2951_s3, [#allocation5], %s2166_s14, %s2166_s14, %s2167_s15  }
 0x1bf   :  { %2150 = dma.done.wait [#allocation3], 1024  }
 0x1c0   :  { %2151 = vsyncadd [#allocation3], 4294966272 }
 0x1c1   :  { %2152 = dma.done.wait [#allocation5], 1024  }
 0x1c2   :  { %2153 = vsyncadd [#allocation5], 4294966272 }
 0x1c3   :  { %1953 = vsyncpa [#allocation3], 1 }
 0x1c4   :  { %1954 = vsyncpa [#allocation5], 1 }

</bundles_post_ra>
